<compile_context>
chip_gen: v7x
topology: tpu7x:2x2x1
jax: 0.10.0
libtpu: 0.0.40
codegen_flags: <defaults>
</compile_context>

<pallas_src>
import functools

import jax
import jax.numpy as jnp
from jax.experimental import pallas as pl
from jax.experimental.pallas import tpu as pltpu


def _round_up(a, b):
    return (a + b - 1) // b * b


def _block_diag(att):
    """att: [H, F] -> [H*F, H]; column h holds att[h] in rows h*F:(h+1)*F."""
    h, f = att.shape
    eye = jnp.eye(h, dtype=att.dtype)
    return (att[:, :, None] * eye[:, None, :]).reshape(h * f, h)


def _gat_layer_kernel(xf_ref, xt_ref, w_ref, asm_ref, adm_ref, bias_ref,
                      adjb_ref, g_ref, b_ref, o_ref, p_sc, out_sc,
                      *, heads, f_out, concat, post, fast):
    """One GATConv layer + LayerNorm + (ReLU | log_softmax) for one row tile.

    xf_ref:  [Np, D_in]        all (source) node features
    xt_ref:  [T, D_in]         destination-row tile of node features
    w_ref:   [D_in, H*F]       linear weight
    asm_ref: [H*F, H]          block-diagonal att_src matrix
    adm_ref: [H*F, H]          block-diagonal att_dst matrix
    bias_ref:[1, out_dim]      GATConv bias
    adjb_ref:[T, Np]           additive adjacency bias (0 / -1e30), bf16
    g/b_ref: [1, out_dim]      LayerNorm affine params
    o_ref:   [T, out_dim]      output tile
    p_sc:    [T, Np] f32       shared exp(e) buffer (one head live at a time)
    out_sc:  [T, H*F] f32      concat slab
    """
    f32 = jnp.float32
    cdt = jnp.bfloat16 if fast else jnp.float32

    # Node feature projection on the MXU.  xt's rows are a subset of xf's rows;
    # re-projecting the tile is cheaper than a dynamic row slice of xw_all.
    xw_all = jnp.dot(xf_ref[...], w_ref[...], preferred_element_type=f32)  # [Np, H*F]
    xw_dst = jnp.dot(xt_ref[...], w_ref[...], preferred_element_type=f32)  # [T,  H*F]
    xw_all_c = xw_all.astype(cdt)

    # All-heads attention coefficients via block-diagonal MXU matmuls:
    #   alpha_src_T[h, j] = <att_src[h], xw_all[j, h*F:(h+1)*F]>
    alpha_src_T = jax.lax.dot_general(
        asm_ref[...], xw_all_c, (((0,), (1,)), ((), ())),
        preferred_element_type=f32)                                        # [H, Np]
    alpha_dst = jnp.dot(xw_dst.astype(cdt), adm_ref[...],
                        preferred_element_type=f32)                        # [T, H]

    adjb = adjb_ref[...]                                                   # [T, Np] bf16

    acc = None
    for h in range(heads):  # static unroll; p_sc bounds the [T, Np] live range
        xh = xw_all_c[:, h * f_out:(h + 1) * f_out]                        # [Np, F]

        # e[i, j] = LeakyReLU_{0.2}(alpha_dst[i] + alpha_src[j]) + adj_bias[i, j]
        s = alpha_dst[:, h:h + 1] + alpha_src_T[h:h + 1, :]                # [T, Np]
        s = jnp.maximum(s, 0.2 * s) + adjb
        s = s - jnp.max(s, axis=1, keepdims=True)
        p_sc[...] = jnp.exp(s)                # masked entries underflow to 0
        p = p_sc[...]
        row_sum = jnp.sum(p, axis=1, keepdims=True)                        # [T, 1]

        # aggregate messages, normalize AFTER the matmul
        out_h = jnp.dot(p.astype(cdt), xh, preferred_element_type=f32)     # [T, F]
        out_h = out_h * pl.reciprocal(row_sum, approx=fast)

        if concat:
            out_sc[:, h * f_out:(h + 1) * f_out] = out_h
        else:
            acc = out_h if acc is None else acc + out_h

    out = out_sc[...] if concat else acc / heads
    out = out + bias_ref[...]

    # LayerNorm over the feature (last) dim, PyTorch eps=1e-5
    mu = jnp.mean(out, axis=1, keepdims=True)
    var = jnp.mean((out - mu) ** 2, axis=1, keepdims=True)
    out = (out - mu) * jax.lax.rsqrt(var + 1e-5) * g_ref[...] + b_ref[...]

    if post == "relu":
        out = jnp.maximum(out, 0.0)
    elif post == "log_softmax":
        m = jnp.max(out, axis=1, keepdims=True)
        z = out - m
        out = z - jnp.log(jnp.sum(jnp.exp(z), axis=1, keepdims=True))

    o_ref[...] = out


def gat_layer(x, w, att_src, att_dst, bias, adj, gamma, beta, *,
              heads, f_out, concat, post, tile_n=None, fast=True):
    """GATConv + LayerNorm + activation.  adj[i, j] = 1 iff edge j -> i
    (self-loops included)."""
    n, d_in = x.shape
    out_dim = heads * f_out if concat else f_out

    n16 = _round_up(n, 16)
    if tile_n is None:
        # biggest tile that keeps double-buffered bf16 adj tile + f32 p scratch
        # within a conservative VMEM budget (fits v7x's smaller VMEM too)
        bytes_per_row = n16 * (2 * 2 + 4) + 1024
        tile_n = max(16, min(1024, ((24 << 20) // bytes_per_row) // 16 * 16))
    tile_n = int(min(max(16, (tile_n // 16) * 16), n16))
    n_pad = _round_up(n16, tile_n)
    n_tiles = n_pad // tile_n

    # Additive attention mask, bf16: 0 where edge, -1e30 where not; padded
    # rows / columns fully masked (self-loops keep real rows well-defined).
    neg = -1e30
    adj_bias = jnp.where(adj > 0, 0.0, neg).astype(jnp.bfloat16)
    adj_bias = jnp.pad(adj_bias, ((0, n_pad - n), (0, n_pad - n)),
                       constant_values=neg)

    cdt = jnp.bfloat16 if fast else jnp.float32
    x_p = jnp.pad(x, ((0, n_pad - n), (0, 0))).astype(cdt)
    w_c = w.astype(cdt)
    asm = _block_diag(att_src).astype(cdt)       # [H*F, H]
    adm = _block_diag(att_dst).astype(cdt)       # [H*F, H]
    bias = bias.reshape(1, out_dim).astype(jnp.float32)
    gamma = gamma.reshape(1, out_dim).astype(jnp.float32)
    beta = beta.reshape(1, out_dim).astype(jnp.float32)

    kernel = functools.partial(_gat_layer_kernel, heads=heads, f_out=f_out,
                               concat=concat, post=post, fast=fast)

    out = pl.pallas_call(
        kernel,
        out_shape=jax.ShapeDtypeStruct((n_pad, out_dim), jnp.float32),
        grid=(n_tiles,),
        in_specs=[
            pl.BlockSpec((n_pad, d_in), lambda i: (0, 0)),        # x (all sources)
            pl.BlockSpec((tile_n, d_in), lambda i: (i, 0)),       # x (dst tile)
            pl.BlockSpec(w_c.shape, lambda i: (0, 0)),            # W
            pl.BlockSpec(asm.shape, lambda i: (0, 0)),            # att_src blkdiag
            pl.BlockSpec(adm.shape, lambda i: (0, 0)),            # att_dst blkdiag
            pl.BlockSpec(bias.shape, lambda i: (0, 0)),           # bias
            pl.BlockSpec((tile_n, n_pad), lambda i: (i, 0)),      # adj bias tile
            pl.BlockSpec(gamma.shape, lambda i: (0, 0)),          # LN gamma
            pl.BlockSpec(beta.shape, lambda i: (0, 0)),           # LN beta
        ],
        out_specs=pl.BlockSpec((tile_n, out_dim), lambda i: (i, 0)),
        scratch_shapes=[
            pltpu.VMEM((tile_n, n_pad), jnp.float32),             # shared exp(e)
            pltpu.VMEM((tile_n, heads * f_out), jnp.float32),     # concat slab
        ],
        compiler_params=pltpu.CompilerParams(
            dimension_semantics=("parallel",)),
    )(x_p, x_p, w_c, asm, adm, bias, adj_bias, gamma, beta)

    return out[:n]


def gat_forward(x, adj, params, *, heads, f1, output_dim, tile_n=None, fast=True):
    (w1, a_s1, a_d1, b1, g1, be1, w2, a_s2, a_d2, b2, g2, be2) = params
    h = gat_layer(x, w1, a_s1, a_d1, b1, adj, g1, be1,
                  heads=heads, f_out=f1, concat=True, post="relu",
                  tile_n=tile_n, fast=fast)
    return gat_layer(h, w2, a_s2, a_d2, b2, adj, g2, be2,
                     heads=1, f_out=output_dim, concat=False,
                     post="log_softmax", tile_n=tile_n, fast=fast)


# --------------------------- pure-JAX reference ---------------------------
def _ref_layer(x, w, a_s, a_d, bias, adj, gamma, beta, heads, f_out, concat, post):
    xw = x @ w
    outs = []
    for h in range(heads):
        xh = xw[:, h * f_out:(h + 1) * f_out]
        asr = jnp.sum(xh * a_s[h], axis=1)
        ads = jnp.sum(xh * a_d[h], axis=1)
        e = ads[:, None] + asr[None, :]
        e = jnp.where(e >= 0, e, 0.2 * e)
        e = jnp.where(adj > 0, e, -1e30)
        p = jax.nn.softmax(e, axis=1)
        p = jnp.where(adj > 0, p, 0.0)
        outs.append(p @ xh)
    out = jnp.concatenate(outs, 1) if concat else sum(outs) / heads
    out = out + bias
    mu = out.mean(1, keepdims=True)
    var = ((out - mu) ** 2).mean(1, keepdims=True)
    out = (out - mu) / jnp.sqrt(var + 1e-5) * gamma + beta
    if post == "relu":
        return jnp.maximum(out, 0.0)
    return jax.nn.log_softmax(out, axis=1)


if __name__ == "__main__":
    key = jax.random.PRNGKey(0)
    keys = jax.random.split(key, 10)

    N, input_dim, hidden_dim, output_dim, heads = 32, 8, 32, 4, 8
    f1 = hidden_dim // heads  # per-head out channels of conv1

    x = jax.random.normal(keys[0], (N, input_dim), jnp.float32)

    # synthetic edge_index [2, E]; dense adjacency with self-loops
    E = 96
    src = jax.random.randint(keys[1], (E,), 0, N)
    dst = jax.random.randint(keys[2], (E,), 0, N)
    adj = jnp.zeros((N, N), jnp.float32).at[dst, src].set(1.0)
    adj = adj.at[jnp.arange(N), jnp.arange(N)].set(1.0)  # add_self_loops=True

    def glorot(k, shape, fan_in, fan_out):
        lim = (6.0 / (fan_in + fan_out)) ** 0.5
        return jax.random.uniform(k, shape, jnp.float32, -lim, lim)

    # conv1 (in=input_dim, out=f1 per head, heads=8, concat=True) + ln1
    w1 = glorot(keys[3], (input_dim, heads * f1), input_dim, heads * f1)
    att_src1 = glorot(keys[4], (heads, f1), f1, f1)
    att_dst1 = glorot(keys[5], (heads, f1), f1, f1)
    b1 = jnp.zeros((1, heads * f1), jnp.float32)
    g1 = jnp.ones((1, hidden_dim), jnp.float32)
    be1 = jnp.zeros((1, hidden_dim), jnp.float32)

    # conv2 (in=hidden_dim, out=output_dim, heads=1, concat=False) + ln2
    w2 = glorot(keys[6], (hidden_dim, output_dim), hidden_dim, output_dim)
    att_src2 = glorot(keys[7], (1, output_dim), output_dim, output_dim)
    att_dst2 = glorot(keys[8], (1, output_dim), output_dim, output_dim)
    b2 = jnp.zeros((1, output_dim), jnp.float32)
    g2 = jnp.ones((1, output_dim), jnp.float32)
    be2 = jnp.zeros((1, output_dim), jnp.float32)

    params = (w1, att_src1, att_dst1, b1, g1, be1,
              w2, att_src2, att_dst2, b2, g2, be2)

    # ---- pure-JAX reference (f32) ----
    h_ref = _ref_layer(x, w1, att_src1, att_dst1, b1, adj, g1, be1,
                       heads, f1, True, "relu")
    out_ref = _ref_layer(h_ref, w2, att_src2, att_dst2, b2, adj, g2, be2,
                         1, output_dim, False, "log_softmax")

    # ---- Pallas forward, strict f32 mode (exercises a 2-step parallel grid) ----
    out_strict = jax.block_until_ready(
        gat_forward(x, adj, params, heads=heads, f1=f1, output_dim=output_dim,
                    tile_n=16, fast=False))
    assert out_strict.shape == (N, output_dim)
    assert bool(jnp.all(jnp.isfinite(out_strict)))
    assert bool(jnp.allclose(out_strict, out_ref, atol=1e-3, rtol=1e-3))

    # ---- Pallas forward, fast mode (bf16 MXU operands, approx reciprocal) ----
    out_fast = jax.block_until_ready(
        gat_forward(x, adj, params, heads=heads, f1=f1, output_dim=output_dim,
                    tile_n=16, fast=True))
    assert out_fast.shape == (N, output_dim)
    assert bool(jnp.all(jnp.isfinite(out_fast)))
    assert bool(jnp.allclose(out_fast, out_ref, atol=1e-1, rtol=1e-1))

    print("KERNEL_OK")
</pallas_src>

<mosaic_0001>
module attributes {stable_mosaic.version = 11 : i64} {
  func.func @_gat_layer_kernel(%arg0: i32, %arg1: memref<32x8xf32, #tpu.memory_space<vmem>>, %arg2: memref<16x8xf32, #tpu.memory_space<vmem>>, %arg3: memref<8x32xf32, #tpu.memory_space<vmem>>, %arg4: memref<32x8xf32, #tpu.memory_space<vmem>>, %arg5: memref<32x8xf32, #tpu.memory_space<vmem>>, %arg6: memref<1x32xf32, #tpu.memory_space<vmem>>, %arg7: memref<16x32xbf16, #tpu.memory_space<vmem>>, %arg8: memref<1x32xf32, #tpu.memory_space<vmem>>, %arg9: memref<1x32xf32, #tpu.memory_space<vmem>>, %arg10: memref<16x32xf32, #tpu.memory_space<vmem>>, %arg11: memref<16x32xf32, #tpu.memory_space<vmem>>, %arg12: memref<16x32xf32, #tpu.memory_space<vmem>>) attributes {dimension_semantics = [#tpu.dimension_semantics<parallel>], iteration_bounds = array<i64: 2>, scalar_prefetch = 0 : i64, scratch_operands = 2 : i64, tpu.core_type = #tpu.core_type<tc>, window_params = [{pipeline_mode = #tpu.pipeline_mode<synchronous>, transform_indices = @transform_0, window_bounds = array<i64: 32, 8>}, {transform_indices = @transform_1, window_bounds = array<i64: 16, 8>}, {pipeline_mode = #tpu.pipeline_mode<synchronous>, transform_indices = @transform_2, window_bounds = array<i64: 8, 32>}, {pipeline_mode = #tpu.pipeline_mode<synchronous>, transform_indices = @transform_3, window_bounds = array<i64: 32, 8>}, {pipeline_mode = #tpu.pipeline_mode<synchronous>, transform_indices = @transform_4, window_bounds = array<i64: 32, 8>}, {pipeline_mode = #tpu.pipeline_mode<synchronous>, transform_indices = @transform_5, window_bounds = array<i64: 1, 32>}, {transform_indices = @transform_6, window_bounds = array<i64: 16, 32>}, {pipeline_mode = #tpu.pipeline_mode<synchronous>, transform_indices = @transform_7, window_bounds = array<i64: 1, 32>}, {pipeline_mode = #tpu.pipeline_mode<synchronous>, transform_indices = @transform_8, window_bounds = array<i64: 1, 32>}, {transform_indices = @transform_9, window_bounds = array<i64: 16, 32>}]} {
    %c0 = arith.constant 0 : index
    %c0_0 = arith.constant 0 : index
    %0 = vector.load %arg1[%c0, %c0_0] : memref<32x8xf32, #tpu.memory_space<vmem>>, vector<32x8xf32>
    %c0_1 = arith.constant 0 : index
    %c0_2 = arith.constant 0 : index
    %1 = vector.load %arg3[%c0_1, %c0_2] : memref<8x32xf32, #tpu.memory_space<vmem>>, vector<8x32xf32>
    %cst = arith.constant dense<0.000000e+00> : vector<32x32xf32>
    %2 = tpu.matmul %0, %1, %cst {dimension_numbers = #tpu.dot_dimension_numbers<[1], [0], [0], [1], [0, 0, 1, 1], [], []>} : vector<32x8xf32>, vector<8x32xf32>, vector<32x32xf32> -> vector<32x32xf32>
    %c0_3 = arith.constant 0 : index
    %c0_4 = arith.constant 0 : index
    %3 = vector.load %arg2[%c0_3, %c0_4] : memref<16x8xf32, #tpu.memory_space<vmem>>, vector<16x8xf32>
    %c0_5 = arith.constant 0 : index
    %c0_6 = arith.constant 0 : index
    %4 = vector.load %arg3[%c0_5, %c0_6] : memref<8x32xf32, #tpu.memory_space<vmem>>, vector<8x32xf32>
    %cst_7 = arith.constant dense<0.000000e+00> : vector<16x32xf32>
    %5 = tpu.matmul %3, %4, %cst_7 {dimension_numbers = #tpu.dot_dimension_numbers<[1], [0], [0], [1], [0, 0, 1, 1], [], []>} : vector<16x8xf32>, vector<8x32xf32>, vector<16x32xf32> -> vector<16x32xf32>
    %c0_8 = arith.constant 0 : index
    %c0_9 = arith.constant 0 : index
    %6 = vector.load %arg4[%c0_8, %c0_9] : memref<32x8xf32, #tpu.memory_space<vmem>>, vector<32x8xf32>
    %cst_10 = arith.constant dense<0.000000e+00> : vector<8x32xf32>
    %7 = tpu.matmul %6, %2, %cst_10 {dimension_numbers = #tpu.dot_dimension_numbers<[0], [1], [1], [0], [0, 1, 1, 0], [], []>} : vector<32x8xf32>, vector<32x32xf32>, vector<8x32xf32> -> vector<8x32xf32>
    %c0_11 = arith.constant 0 : index
    %c0_12 = arith.constant 0 : index
    %8 = vector.load %arg5[%c0_11, %c0_12] : memref<32x8xf32, #tpu.memory_space<vmem>>, vector<32x8xf32>
    %cst_13 = arith.constant dense<0.000000e+00> : vector<16x8xf32>
    %9 = tpu.matmul %5, %8, %cst_13 {dimension_numbers = #tpu.dot_dimension_numbers<[1], [0], [0], [1], [0, 0, 1, 1], [], []>} : vector<16x32xf32>, vector<32x8xf32>, vector<16x8xf32> -> vector<16x8xf32>
    %c0_14 = arith.constant 0 : index
    %c0_15 = arith.constant 0 : index
    %10 = vector.load %arg7[%c0_14, %c0_15] : memref<16x32xbf16, #tpu.memory_space<vmem>>, vector<16x32xbf16>
    %11 = vector.extract_strided_slice %2 {offsets = [0, 0], sizes = [32, 4], strides = [1, 1]} : vector<32x32xf32> to vector<32x4xf32>
    %12 = vector.extract_strided_slice %9 {offsets = [0, 0], sizes = [16, 1], strides = [1, 1]} : vector<16x8xf32> to vector<16x1xf32>
    %13 = vector.extract_strided_slice %7 {offsets = [0, 0], sizes = [1, 32], strides = [1, 1]} : vector<8x32xf32> to vector<1x32xf32>
    %14 = vector.broadcast %12 : vector<16x1xf32> to vector<16x32xf32>
    %15 = vector.broadcast %13 : vector<1x32xf32> to vector<16x32xf32>
    %16 = arith.addf %14, %15 : vector<16x32xf32>
    %cst_16 = arith.constant 2.000000e-01 : f32
    %17 = vector.broadcast %cst_16 : f32 to vector<16x32xf32>
    %18 = arith.mulf %17, %16 : vector<16x32xf32>
    %19 = arith.maximumf %16, %18 : vector<16x32xf32>
    %20 = arith.extf %10 : vector<16x32xbf16> to vector<16x32xf32>
    %21 = arith.addf %19, %20 : vector<16x32xf32>
    %cst_17 = arith.constant dense<0xFF800000> : vector<16xf32>
    %22 = vector.multi_reduction <maximumf>, %21, %cst_17 [1] : vector<16x32xf32> to vector<16xf32>
    %23 = vector.shape_cast %22 : vector<16xf32> to vector<16x1xf32>
    %24 = vector.broadcast %23 : vector<16x1xf32> to vector<16x32xf32>
    %25 = arith.subf %21, %24 : vector<16x32xf32>
    %26 = math.exp %25 : vector<16x32xf32>
    %c0_18 = arith.constant 0 : index
    %c0_19 = arith.constant 0 : index
    %27 = vector.load %arg11[%c0_18, %c0_19] : memref<16x32xf32, #tpu.memory_space<vmem>>, vector<16x32xf32>
    tpu.vector_store %arg11[%c0_18, %c0_19], %26 {strides = array<i32>} : memref<16x32xf32, #tpu.memory_space<vmem>>, vector<16x32xf32>,
    %c0_20 = arith.constant 0 : index
    %c0_21 = arith.constant 0 : index
    %28 = vector.load %arg11[%c0_20, %c0_21] : memref<16x32xf32, #tpu.memory_space<vmem>>, vector<16x32xf32>
    %cst_22 = arith.constant dense<0.000000e+00> : vector<16xf32>
    %29 = vector.multi_reduction <add>, %28, %cst_22 [1] : vector<16x32xf32> to vector<16xf32>
    %30 = vector.shape_cast %29 : vector<16xf32> to vector<16x1xf32>
    %cst_23 = arith.constant dense<0.000000e+00> : vector<16x4xf32>
    %31 = tpu.matmul %28, %11, %cst_23 {dimension_numbers = #tpu.dot_dimension_numbers<[1], [0], [0], [1], [0, 0, 1, 1], [], []>} : vector<16x32xf32>, vector<32x4xf32>, vector<16x4xf32> -> vector<16x4xf32>
    %32 = tpu.reciprocal %30 : vector<16x1xf32> -> vector<16x1xf32>
    %33 = vector.broadcast %32 : vector<16x1xf32> to vector<16x4xf32>
    %34 = arith.mulf %31, %33 : vector<16x4xf32>
    %c0_24 = arith.constant 0 : index
    %c0_25 = arith.constant 0 : index
    %35 = vector.load %arg12[%c0_24, %c0_25] : memref<16x32xf32, #tpu.memory_space<vmem>>, vector<16x4xf32>
    tpu.vector_store %arg12[%c0_24, %c0_25], %34 {strides = array<i32>} : memref<16x32xf32, #tpu.memory_space<vmem>>, vector<16x4xf32>,
    %36 = vector.extract_strided_slice %2 {offsets = [0, 4], sizes = [32, 4], strides = [1, 1]} : vector<32x32xf32> to vector<32x4xf32>
    %37 = vector.extract_strided_slice %9 {offsets = [0, 1], sizes = [16, 1], strides = [1, 1]} : vector<16x8xf32> to vector<16x1xf32>
    %38 = vector.extract_strided_slice %7 {offsets = [1, 0], sizes = [1, 32], strides = [1, 1]} : vector<8x32xf32> to vector<1x32xf32>
    %39 = vector.broadcast %37 : vector<16x1xf32> to vector<16x32xf32>
    %40 = vector.broadcast %38 : vector<1x32xf32> to vector<16x32xf32>
    %41 = arith.addf %39, %40 : vector<16x32xf32>
    %cst_26 = arith.constant 2.000000e-01 : f32
    %42 = vector.broadcast %cst_26 : f32 to vector<16x32xf32>
    %43 = arith.mulf %42, %41 : vector<16x32xf32>
    %44 = arith.maximumf %41, %43 : vector<16x32xf32>
    %45 = arith.extf %10 : vector<16x32xbf16> to vector<16x32xf32>
    %46 = arith.addf %44, %45 : vector<16x32xf32>
    %cst_27 = arith.constant dense<0xFF800000> : vector<16xf32>
    %47 = vector.multi_reduction <maximumf>, %46, %cst_27 [1] : vector<16x32xf32> to vector<16xf32>
    %48 = vector.shape_cast %47 : vector<16xf32> to vector<16x1xf32>
    %49 = vector.broadcast %48 : vector<16x1xf32> to vector<16x32xf32>
    %50 = arith.subf %46, %49 : vector<16x32xf32>
    %51 = math.exp %50 : vector<16x32xf32>
    %c0_28 = arith.constant 0 : index
    %c0_29 = arith.constant 0 : index
    %52 = vector.load %arg11[%c0_28, %c0_29] : memref<16x32xf32, #tpu.memory_space<vmem>>, vector<16x32xf32>
    tpu.vector_store %arg11[%c0_28, %c0_29], %51 {strides = array<i32>} : memref<16x32xf32, #tpu.memory_space<vmem>>, vector<16x32xf32>,
    %c0_30 = arith.constant 0 : index
    %c0_31 = arith.constant 0 : index
    %53 = vector.load %arg11[%c0_30, %c0_31] : memref<16x32xf32, #tpu.memory_space<vmem>>, vector<16x32xf32>
    %cst_32 = arith.constant dense<0.000000e+00> : vector<16xf32>
    %54 = vector.multi_reduction <add>, %53, %cst_32 [1] : vector<16x32xf32> to vector<16xf32>
    %55 = vector.shape_cast %54 : vector<16xf32> to vector<16x1xf32>
    %cst_33 = arith.constant dense<0.000000e+00> : vector<16x4xf32>
    %56 = tpu.matmul %53, %36, %cst_33 {dimension_numbers = #tpu.dot_dimension_numbers<[1], [0], [0], [1], [0, 0, 1, 1], [], []>} : vector<16x32xf32>, vector<32x4xf32>, vector<16x4xf32> -> vector<16x4xf32>
    %57 = tpu.reciprocal %55 : vector<16x1xf32> -> vector<16x1xf32>
    %58 = vector.broadcast %57 : vector<16x1xf32> to vector<16x4xf32>
    %59 = arith.mulf %56, %58 : vector<16x4xf32>
    %c0_34 = arith.constant 0 : index
    %c4 = arith.constant 4 : index
    %60 = vector.load %arg12[%c0_34, %c4] : memref<16x32xf32, #tpu.memory_space<vmem>>, vector<16x4xf32>
    tpu.vector_store %arg12[%c0_34, %c4], %59 {strides = array<i32>} : memref<16x32xf32, #tpu.memory_space<vmem>>, vector<16x4xf32>,
    %61 = vector.extract_strided_slice %2 {offsets = [0, 8], sizes = [32, 4], strides = [1, 1]} : vector<32x32xf32> to vector<32x4xf32>
    %62 = vector.extract_strided_slice %9 {offsets = [0, 2], sizes = [16, 1], strides = [1, 1]} : vector<16x8xf32> to vector<16x1xf32>
    %63 = vector.extract_strided_slice %7 {offsets = [2, 0], sizes = [1, 32], strides = [1, 1]} : vector<8x32xf32> to vector<1x32xf32>
    %64 = vector.broadcast %62 : vector<16x1xf32> to vector<16x32xf32>
    %65 = vector.broadcast %63 : vector<1x32xf32> to vector<16x32xf32>
    %66 = arith.addf %64, %65 : vector<16x32xf32>
    %cst_35 = arith.constant 2.000000e-01 : f32
    %67 = vector.broadcast %cst_35 : f32 to vector<16x32xf32>
    %68 = arith.mulf %67, %66 : vector<16x32xf32>
    %69 = arith.maximumf %66, %68 : vector<16x32xf32>
    %70 = arith.extf %10 : vector<16x32xbf16> to vector<16x32xf32>
    %71 = arith.addf %69, %70 : vector<16x32xf32>
    %cst_36 = arith.constant dense<0xFF800000> : vector<16xf32>
    %72 = vector.multi_reduction <maximumf>, %71, %cst_36 [1] : vector<16x32xf32> to vector<16xf32>
    %73 = vector.shape_cast %72 : vector<16xf32> to vector<16x1xf32>
    %74 = vector.broadcast %73 : vector<16x1xf32> to vector<16x32xf32>
    %75 = arith.subf %71, %74 : vector<16x32xf32>
    %76 = math.exp %75 : vector<16x32xf32>
    %c0_37 = arith.constant 0 : index
    %c0_38 = arith.constant 0 : index
    %77 = vector.load %arg11[%c0_37, %c0_38] : memref<16x32xf32, #tpu.memory_space<vmem>>, vector<16x32xf32>
    tpu.vector_store %arg11[%c0_37, %c0_38], %76 {strides = array<i32>} : memref<16x32xf32, #tpu.memory_space<vmem>>, vector<16x32xf32>,
    %c0_39 = arith.constant 0 : index
    %c0_40 = arith.constant 0 : index
    %78 = vector.load %arg11[%c0_39, %c0_40] : memref<16x32xf32, #tpu.memory_space<vmem>>, vector<16x32xf32>
    %cst_41 = arith.constant dense<0.000000e+00> : vector<16xf32>
    %79 = vector.multi_reduction <add>, %78, %cst_41 [1] : vector<16x32xf32> to vector<16xf32>
    %80 = vector.shape_cast %79 : vector<16xf32> to vector<16x1xf32>
    %cst_42 = arith.constant dense<0.000000e+00> : vector<16x4xf32>
    %81 = tpu.matmul %78, %61, %cst_42 {dimension_numbers = #tpu.dot_dimension_numbers<[1], [0], [0], [1], [0, 0, 1, 1], [], []>} : vector<16x32xf32>, vector<32x4xf32>, vector<16x4xf32> -> vector<16x4xf32>
    %82 = tpu.reciprocal %80 : vector<16x1xf32> -> vector<16x1xf32>
    %83 = vector.broadcast %82 : vector<16x1xf32> to vector<16x4xf32>
    %84 = arith.mulf %81, %83 : vector<16x4xf32>
    %c0_43 = arith.constant 0 : index
    %c8 = arith.constant 8 : index
    %85 = vector.load %arg12[%c0_43, %c8] : memref<16x32xf32, #tpu.memory_space<vmem>>, vector<16x4xf32>
    tpu.vector_store %arg12[%c0_43, %c8], %84 {strides = array<i32>} : memref<16x32xf32, #tpu.memory_space<vmem>>, vector<16x4xf32>,
    %86 = vector.extract_strided_slice %2 {offsets = [0, 12], sizes = [32, 4], strides = [1, 1]} : vector<32x32xf32> to vector<32x4xf32>
    %87 = vector.extract_strided_slice %9 {offsets = [0, 3], sizes = [16, 1], strides = [1, 1]} : vector<16x8xf32> to vector<16x1xf32>
    %88 = vector.extract_strided_slice %7 {offsets = [3, 0], sizes = [1, 32], strides = [1, 1]} : vector<8x32xf32> to vector<1x32xf32>
    %89 = vector.broadcast %87 : vector<16x1xf32> to vector<16x32xf32>
    %90 = vector.broadcast %88 : vector<1x32xf32> to vector<16x32xf32>
    %91 = arith.addf %89, %90 : vector<16x32xf32>
    %cst_44 = arith.constant 2.000000e-01 : f32
    %92 = vector.broadcast %cst_44 : f32 to vector<16x32xf32>
    %93 = arith.mulf %92, %91 : vector<16x32xf32>
    %94 = arith.maximumf %91, %93 : vector<16x32xf32>
    %95 = arith.extf %10 : vector<16x32xbf16> to vector<16x32xf32>
    %96 = arith.addf %94, %95 : vector<16x32xf32>
    %cst_45 = arith.constant dense<0xFF800000> : vector<16xf32>
    %97 = vector.multi_reduction <maximumf>, %96, %cst_45 [1] : vector<16x32xf32> to vector<16xf32>
    %98 = vector.shape_cast %97 : vector<16xf32> to vector<16x1xf32>
    %99 = vector.broadcast %98 : vector<16x1xf32> to vector<16x32xf32>
    %100 = arith.subf %96, %99 : vector<16x32xf32>
    %101 = math.exp %100 : vector<16x32xf32>
    %c0_46 = arith.constant 0 : index
    %c0_47 = arith.constant 0 : index
    %102 = vector.load %arg11[%c0_46, %c0_47] : memref<16x32xf32, #tpu.memory_space<vmem>>, vector<16x32xf32>
    tpu.vector_store %arg11[%c0_46, %c0_47], %101 {strides = array<i32>} : memref<16x32xf32, #tpu.memory_space<vmem>>, vector<16x32xf32>,
    %c0_48 = arith.constant 0 : index
    %c0_49 = arith.constant 0 : index
    %103 = vector.load %arg11[%c0_48, %c0_49] : memref<16x32xf32, #tpu.memory_space<vmem>>, vector<16x32xf32>
    %cst_50 = arith.constant dense<0.000000e+00> : vector<16xf32>
    %104 = vector.multi_reduction <add>, %103, %cst_50 [1] : vector<16x32xf32> to vector<16xf32>
    %105 = vector.shape_cast %104 : vector<16xf32> to vector<16x1xf32>
    %cst_51 = arith.constant dense<0.000000e+00> : vector<16x4xf32>
    %106 = tpu.matmul %103, %86, %cst_51 {dimension_numbers = #tpu.dot_dimension_numbers<[1], [0], [0], [1], [0, 0, 1, 1], [], []>} : vector<16x32xf32>, vector<32x4xf32>, vector<16x4xf32> -> vector<16x4xf32>
    %107 = tpu.reciprocal %105 : vector<16x1xf32> -> vector<16x1xf32>
    %108 = vector.broadcast %107 : vector<16x1xf32> to vector<16x4xf32>
    %109 = arith.mulf %106, %108 : vector<16x4xf32>
    %c0_52 = arith.constant 0 : index
    %c12 = arith.constant 12 : index
    %110 = vector.load %arg12[%c0_52, %c12] : memref<16x32xf32, #tpu.memory_space<vmem>>, vector<16x4xf32>
    tpu.vector_store %arg12[%c0_52, %c12], %109 {strides = array<i32>} : memref<16x32xf32, #tpu.memory_space<vmem>>, vector<16x4xf32>,
    %111 = vector.extract_strided_slice %2 {offsets = [0, 16], sizes = [32, 4], strides = [1, 1]} : vector<32x32xf32> to vector<32x4xf32>
    %112 = vector.extract_strided_slice %9 {offsets = [0, 4], sizes = [16, 1], strides = [1, 1]} : vector<16x8xf32> to vector<16x1xf32>
    %113 = vector.extract_strided_slice %7 {offsets = [4, 0], sizes = [1, 32], strides = [1, 1]} : vector<8x32xf32> to vector<1x32xf32>
    %114 = vector.broadcast %112 : vector<16x1xf32> to vector<16x32xf32>
    %115 = vector.broadcast %113 : vector<1x32xf32> to vector<16x32xf32>
    %116 = arith.addf %114, %115 : vector<16x32xf32>
    %cst_53 = arith.constant 2.000000e-01 : f32
    %117 = vector.broadcast %cst_53 : f32 to vector<16x32xf32>
    %118 = arith.mulf %117, %116 : vector<16x32xf32>
    %119 = arith.maximumf %116, %118 : vector<16x32xf32>
    %120 = arith.extf %10 : vector<16x32xbf16> to vector<16x32xf32>
    %121 = arith.addf %119, %120 : vector<16x32xf32>
    %cst_54 = arith.constant dense<0xFF800000> : vector<16xf32>
    %122 = vector.multi_reduction <maximumf>, %121, %cst_54 [1] : vector<16x32xf32> to vector<16xf32>
    %123 = vector.shape_cast %122 : vector<16xf32> to vector<16x1xf32>
    %124 = vector.broadcast %123 : vector<16x1xf32> to vector<16x32xf32>
    %125 = arith.subf %121, %124 : vector<16x32xf32>
    %126 = math.exp %125 : vector<16x32xf32>
    %c0_55 = arith.constant 0 : index
    %c0_56 = arith.constant 0 : index
    %127 = vector.load %arg11[%c0_55, %c0_56] : memref<16x32xf32, #tpu.memory_space<vmem>>, vector<16x32xf32>
    tpu.vector_store %arg11[%c0_55, %c0_56], %126 {strides = array<i32>} : memref<16x32xf32, #tpu.memory_space<vmem>>, vector<16x32xf32>,
    %c0_57 = arith.constant 0 : index
    %c0_58 = arith.constant 0 : index
    %128 = vector.load %arg11[%c0_57, %c0_58] : memref<16x32xf32, #tpu.memory_space<vmem>>, vector<16x32xf32>
    %cst_59 = arith.constant dense<0.000000e+00> : vector<16xf32>
    %129 = vector.multi_reduction <add>, %128, %cst_59 [1] : vector<16x32xf32> to vector<16xf32>
    %130 = vector.shape_cast %129 : vector<16xf32> to vector<16x1xf32>
    %cst_60 = arith.constant dense<0.000000e+00> : vector<16x4xf32>
    %131 = tpu.matmul %128, %111, %cst_60 {dimension_numbers = #tpu.dot_dimension_numbers<[1], [0], [0], [1], [0, 0, 1, 1], [], []>} : vector<16x32xf32>, vector<32x4xf32>, vector<16x4xf32> -> vector<16x4xf32>
    %132 = tpu.reciprocal %130 : vector<16x1xf32> -> vector<16x1xf32>
    %133 = vector.broadcast %132 : vector<16x1xf32> to vector<16x4xf32>
    %134 = arith.mulf %131, %133 : vector<16x4xf32>
    %c0_61 = arith.constant 0 : index
    %c16 = arith.constant 16 : index
    %135 = vector.load %arg12[%c0_61, %c16] : memref<16x32xf32, #tpu.memory_space<vmem>>, vector<16x4xf32>
    tpu.vector_store %arg12[%c0_61, %c16], %134 {strides = array<i32>} : memref<16x32xf32, #tpu.memory_space<vmem>>, vector<16x4xf32>,
    %136 = vector.extract_strided_slice %2 {offsets = [0, 20], sizes = [32, 4], strides = [1, 1]} : vector<32x32xf32> to vector<32x4xf32>
    %137 = vector.extract_strided_slice %9 {offsets = [0, 5], sizes = [16, 1], strides = [1, 1]} : vector<16x8xf32> to vector<16x1xf32>
    %138 = vector.extract_strided_slice %7 {offsets = [5, 0], sizes = [1, 32], strides = [1, 1]} : vector<8x32xf32> to vector<1x32xf32>
    %139 = vector.broadcast %137 : vector<16x1xf32> to vector<16x32xf32>
    %140 = vector.broadcast %138 : vector<1x32xf32> to vector<16x32xf32>
    %141 = arith.addf %139, %140 : vector<16x32xf32>
    %cst_62 = arith.constant 2.000000e-01 : f32
    %142 = vector.broadcast %cst_62 : f32 to vector<16x32xf32>
    %143 = arith.mulf %142, %141 : vector<16x32xf32>
    %144 = arith.maximumf %141, %143 : vector<16x32xf32>
    %145 = arith.extf %10 : vector<16x32xbf16> to vector<16x32xf32>
    %146 = arith.addf %144, %145 : vector<16x32xf32>
    %cst_63 = arith.constant dense<0xFF800000> : vector<16xf32>
    %147 = vector.multi_reduction <maximumf>, %146, %cst_63 [1] : vector<16x32xf32> to vector<16xf32>
    %148 = vector.shape_cast %147 : vector<16xf32> to vector<16x1xf32>
    %149 = vector.broadcast %148 : vector<16x1xf32> to vector<16x32xf32>
    %150 = arith.subf %146, %149 : vector<16x32xf32>
    %151 = math.exp %150 : vector<16x32xf32>
    %c0_64 = arith.constant 0 : index
    %c0_65 = arith.constant 0 : index
    %152 = vector.load %arg11[%c0_64, %c0_65] : memref<16x32xf32, #tpu.memory_space<vmem>>, vector<16x32xf32>
    tpu.vector_store %arg11[%c0_64, %c0_65], %151 {strides = array<i32>} : memref<16x32xf32, #tpu.memory_space<vmem>>, vector<16x32xf32>,
    %c0_66 = arith.constant 0 : index
    %c0_67 = arith.constant 0 : index
    %153 = vector.load %arg11[%c0_66, %c0_67] : memref<16x32xf32, #tpu.memory_space<vmem>>, vector<16x32xf32>
    %cst_68 = arith.constant dense<0.000000e+00> : vector<16xf32>
    %154 = vector.multi_reduction <add>, %153, %cst_68 [1] : vector<16x32xf32> to vector<16xf32>
    %155 = vector.shape_cast %154 : vector<16xf32> to vector<16x1xf32>
    %cst_69 = arith.constant dense<0.000000e+00> : vector<16x4xf32>
    %156 = tpu.matmul %153, %136, %cst_69 {dimension_numbers = #tpu.dot_dimension_numbers<[1], [0], [0], [1], [0, 0, 1, 1], [], []>} : vector<16x32xf32>, vector<32x4xf32>, vector<16x4xf32> -> vector<16x4xf32>
    %157 = tpu.reciprocal %155 : vector<16x1xf32> -> vector<16x1xf32>
    %158 = vector.broadcast %157 : vector<16x1xf32> to vector<16x4xf32>
    %159 = arith.mulf %156, %158 : vector<16x4xf32>
    %c0_70 = arith.constant 0 : index
    %c20 = arith.constant 20 : index
    %160 = vector.load %arg12[%c0_70, %c20] : memref<16x32xf32, #tpu.memory_space<vmem>>, vector<16x4xf32>
    tpu.vector_store %arg12[%c0_70, %c20], %159 {strides = array<i32>} : memref<16x32xf32, #tpu.memory_space<vmem>>, vector<16x4xf32>,
    %161 = vector.extract_strided_slice %2 {offsets = [0, 24], sizes = [32, 4], strides = [1, 1]} : vector<32x32xf32> to vector<32x4xf32>
    %162 = vector.extract_strided_slice %9 {offsets = [0, 6], sizes = [16, 1], strides = [1, 1]} : vector<16x8xf32> to vector<16x1xf32>
    %163 = vector.extract_strided_slice %7 {offsets = [6, 0], sizes = [1, 32], strides = [1, 1]} : vector<8x32xf32> to vector<1x32xf32>
    %164 = vector.broadcast %162 : vector<16x1xf32> to vector<16x32xf32>
    %165 = vector.broadcast %163 : vector<1x32xf32> to vector<16x32xf32>
    %166 = arith.addf %164, %165 : vector<16x32xf32>
    %cst_71 = arith.constant 2.000000e-01 : f32
    %167 = vector.broadcast %cst_71 : f32 to vector<16x32xf32>
    %168 = arith.mulf %167, %166 : vector<16x32xf32>
    %169 = arith.maximumf %166, %168 : vector<16x32xf32>
    %170 = arith.extf %10 : vector<16x32xbf16> to vector<16x32xf32>
    %171 = arith.addf %169, %170 : vector<16x32xf32>
    %cst_72 = arith.constant dense<0xFF800000> : vector<16xf32>
    %172 = vector.multi_reduction <maximumf>, %171, %cst_72 [1] : vector<16x32xf32> to vector<16xf32>
    %173 = vector.shape_cast %172 : vector<16xf32> to vector<16x1xf32>
    %174 = vector.broadcast %173 : vector<16x1xf32> to vector<16x32xf32>
    %175 = arith.subf %171, %174 : vector<16x32xf32>
    %176 = math.exp %175 : vector<16x32xf32>
    %c0_73 = arith.constant 0 : index
    %c0_74 = arith.constant 0 : index
    %177 = vector.load %arg11[%c0_73, %c0_74] : memref<16x32xf32, #tpu.memory_space<vmem>>, vector<16x32xf32>
    tpu.vector_store %arg11[%c0_73, %c0_74], %176 {strides = array<i32>} : memref<16x32xf32, #tpu.memory_space<vmem>>, vector<16x32xf32>,
    %c0_75 = arith.constant 0 : index
    %c0_76 = arith.constant 0 : index
    %178 = vector.load %arg11[%c0_75, %c0_76] : memref<16x32xf32, #tpu.memory_space<vmem>>, vector<16x32xf32>
    %cst_77 = arith.constant dense<0.000000e+00> : vector<16xf32>
    %179 = vector.multi_reduction <add>, %178, %cst_77 [1] : vector<16x32xf32> to vector<16xf32>
    %180 = vector.shape_cast %179 : vector<16xf32> to vector<16x1xf32>
    %cst_78 = arith.constant dense<0.000000e+00> : vector<16x4xf32>
    %181 = tpu.matmul %178, %161, %cst_78 {dimension_numbers = #tpu.dot_dimension_numbers<[1], [0], [0], [1], [0, 0, 1, 1], [], []>} : vector<16x32xf32>, vector<32x4xf32>, vector<16x4xf32> -> vector<16x4xf32>
    %182 = tpu.reciprocal %180 : vector<16x1xf32> -> vector<16x1xf32>
    %183 = vector.broadcast %182 : vector<16x1xf32> to vector<16x4xf32>
    %184 = arith.mulf %181, %183 : vector<16x4xf32>
    %c0_79 = arith.constant 0 : index
    %c24 = arith.constant 24 : index
    %185 = vector.load %arg12[%c0_79, %c24] : memref<16x32xf32, #tpu.memory_space<vmem>>, vector<16x4xf32>
    tpu.vector_store %arg12[%c0_79, %c24], %184 {strides = array<i32>} : memref<16x32xf32, #tpu.memory_space<vmem>>, vector<16x4xf32>,
    %186 = vector.extract_strided_slice %2 {offsets = [0, 28], sizes = [32, 4], strides = [1, 1]} : vector<32x32xf32> to vector<32x4xf32>
    %187 = vector.extract_strided_slice %9 {offsets = [0, 7], sizes = [16, 1], strides = [1, 1]} : vector<16x8xf32> to vector<16x1xf32>
    %188 = vector.extract_strided_slice %7 {offsets = [7, 0], sizes = [1, 32], strides = [1, 1]} : vector<8x32xf32> to vector<1x32xf32>
    %189 = vector.broadcast %187 : vector<16x1xf32> to vector<16x32xf32>
    %190 = vector.broadcast %188 : vector<1x32xf32> to vector<16x32xf32>
    %191 = arith.addf %189, %190 : vector<16x32xf32>
    %cst_80 = arith.constant 2.000000e-01 : f32
    %192 = vector.broadcast %cst_80 : f32 to vector<16x32xf32>
    %193 = arith.mulf %192, %191 : vector<16x32xf32>
    %194 = arith.maximumf %191, %193 : vector<16x32xf32>
    %195 = arith.extf %10 : vector<16x32xbf16> to vector<16x32xf32>
    %196 = arith.addf %194, %195 : vector<16x32xf32>
    %cst_81 = arith.constant dense<0xFF800000> : vector<16xf32>
    %197 = vector.multi_reduction <maximumf>, %196, %cst_81 [1] : vector<16x32xf32> to vector<16xf32>
    %198 = vector.shape_cast %197 : vector<16xf32> to vector<16x1xf32>
    %199 = vector.broadcast %198 : vector<16x1xf32> to vector<16x32xf32>
    %200 = arith.subf %196, %199 : vector<16x32xf32>
    %201 = math.exp %200 : vector<16x32xf32>
    %c0_82 = arith.constant 0 : index
    %c0_83 = arith.constant 0 : index
    %202 = vector.load %arg11[%c0_82, %c0_83] : memref<16x32xf32, #tpu.memory_space<vmem>>, vector<16x32xf32>
    tpu.vector_store %arg11[%c0_82, %c0_83], %201 {strides = array<i32>} : memref<16x32xf32, #tpu.memory_space<vmem>>, vector<16x32xf32>,
    %c0_84 = arith.constant 0 : index
    %c0_85 = arith.constant 0 : index
    %203 = vector.load %arg11[%c0_84, %c0_85] : memref<16x32xf32, #tpu.memory_space<vmem>>, vector<16x32xf32>
    %cst_86 = arith.constant dense<0.000000e+00> : vector<16xf32>
    %204 = vector.multi_reduction <add>, %203, %cst_86 [1] : vector<16x32xf32> to vector<16xf32>
    %205 = vector.shape_cast %204 : vector<16xf32> to vector<16x1xf32>
    %cst_87 = arith.constant dense<0.000000e+00> : vector<16x4xf32>
    %206 = tpu.matmul %203, %186, %cst_87 {dimension_numbers = #tpu.dot_dimension_numbers<[1], [0], [0], [1], [0, 0, 1, 1], [], []>} : vector<16x32xf32>, vector<32x4xf32>, vector<16x4xf32> -> vector<16x4xf32>
    %207 = tpu.reciprocal %205 : vector<16x1xf32> -> vector<16x1xf32>
    %208 = vector.broadcast %207 : vector<16x1xf32> to vector<16x4xf32>
    %209 = arith.mulf %206, %208 : vector<16x4xf32>
    %c0_88 = arith.constant 0 : index
    %c28 = arith.constant 28 : index
    %210 = vector.load %arg12[%c0_88, %c28] : memref<16x32xf32, #tpu.memory_space<vmem>>, vector<16x4xf32>
    tpu.vector_store %arg12[%c0_88, %c28], %209 {strides = array<i32>} : memref<16x32xf32, #tpu.memory_space<vmem>>, vector<16x4xf32>,
    %c0_89 = arith.constant 0 : index
    %c0_90 = arith.constant 0 : index
    %211 = vector.load %arg12[%c0_89, %c0_90] : memref<16x32xf32, #tpu.memory_space<vmem>>, vector<16x32xf32>
    %c0_91 = arith.constant 0 : index
    %c0_92 = arith.constant 0 : index
    %212 = vector.load %arg6[%c0_91, %c0_92] : memref<1x32xf32, #tpu.memory_space<vmem>>, vector<1x32xf32>
    %213 = vector.broadcast %212 : vector<1x32xf32> to vector<16x32xf32>
    %214 = arith.addf %211, %213 : vector<16x32xf32>
    %cst_93 = arith.constant dense<0.000000e+00> : vector<16xf32>
    %215 = vector.multi_reduction <add>, %214, %cst_93 [1] : vector<16x32xf32> to vector<16xf32>
    %216 = vector.shape_cast %215 : vector<16xf32> to vector<16x1xf32>
    %cst_94 = arith.constant 3.200000e+01 : f32
    %217 = vector.broadcast %cst_94 : f32 to vector<16x1xf32>
    %218 = arith.divf %216, %217 : vector<16x1xf32>
    %219 = vector.broadcast %218 : vector<16x1xf32> to vector<16x32xf32>
    %220 = arith.subf %214, %219 : vector<16x32xf32>
    %221 = arith.mulf %220, %220 : vector<16x32xf32>
    %cst_95 = arith.constant dense<0.000000e+00> : vector<16xf32>
    %222 = vector.multi_reduction <add>, %221, %cst_95 [1] : vector<16x32xf32> to vector<16xf32>
    %223 = vector.shape_cast %222 : vector<16xf32> to vector<16x1xf32>
    %cst_96 = arith.constant 3.200000e+01 : f32
    %224 = vector.broadcast %cst_96 : f32 to vector<16x1xf32>
    %225 = arith.divf %223, %224 : vector<16x1xf32>
    %226 = vector.broadcast %218 : vector<16x1xf32> to vector<16x32xf32>
    %227 = arith.subf %214, %226 : vector<16x32xf32>
    %cst_97 = arith.constant 9.99999974E-6 : f32
    %228 = vector.broadcast %cst_97 : f32 to vector<16x1xf32>
    %229 = arith.addf %225, %228 : vector<16x1xf32>
    %230 = math.rsqrt %229 : vector<16x1xf32>
    %231 = vector.broadcast %230 : vector<16x1xf32> to vector<16x32xf32>
    %232 = arith.mulf %227, %231 : vector<16x32xf32>
    %c0_98 = arith.constant 0 : index
    %c0_99 = arith.constant 0 : index
    %233 = vector.load %arg8[%c0_98, %c0_99] : memref<1x32xf32, #tpu.memory_space<vmem>>, vector<1x32xf32>
    %234 = vector.broadcast %233 : vector<1x32xf32> to vector<16x32xf32>
    %235 = arith.mulf %232, %234 : vector<16x32xf32>
    %c0_100 = arith.constant 0 : index
    %c0_101 = arith.constant 0 : index
    %236 = vector.load %arg9[%c0_100, %c0_101] : memref<1x32xf32, #tpu.memory_space<vmem>>, vector<1x32xf32>
    %237 = vector.broadcast %236 : vector<1x32xf32> to vector<16x32xf32>
    %238 = arith.addf %235, %237 : vector<16x32xf32>
    %cst_102 = arith.constant 0.000000e+00 : f32
    %239 = vector.broadcast %cst_102 : f32 to vector<16x32xf32>
    %240 = arith.maximumf %238, %239 : vector<16x32xf32>
    %c0_103 = arith.constant 0 : index
    %c0_104 = arith.constant 0 : index
    %241 = vector.load %arg10[%c0_103, %c0_104] : memref<16x32xf32, #tpu.memory_space<vmem>>, vector<16x32xf32>
    tpu.vector_store %arg10[%c0_103, %c0_104], %240 {strides = array<i32>} : memref<16x32xf32, #tpu.memory_space<vmem>>, vector<16x32xf32>,
    return
  }
  func.func @transform_0(%arg0: i32) -> (i32, i32) {
    %c0_i32 = arith.constant 0 : i32
    %c0_i32_0 = arith.constant 0 : i32
    %c0_i32_1 = arith.constant 0 : i32
    return %c0_i32, %c0_i32_0 : i32, i32
  }
  func.func @transform_1(%arg0: i32) -> (i32, i32) {
    %c0_i32 = arith.constant 0 : i32
    %c0_i32_0 = arith.constant 0 : i32
    return %arg0, %c0_i32 : i32, i32
  }
  func.func @transform_2(%arg0: i32) -> (i32, i32) {
    %c0_i32 = arith.constant 0 : i32
    %c0_i32_0 = arith.constant 0 : i32
    %c0_i32_1 = arith.constant 0 : i32
    return %c0_i32, %c0_i32_0 : i32, i32
  }
  func.func @transform_3(%arg0: i32) -> (i32, i32) {
    %c0_i32 = arith.constant 0 : i32
    %c0_i32_0 = arith.constant 0 : i32
    %c0_i32_1 = arith.constant 0 : i32
    return %c0_i32, %c0_i32_0 : i32, i32
  }
  func.func @transform_4(%arg0: i32) -> (i32, i32) {
    %c0_i32 = arith.constant 0 : i32
    %c0_i32_0 = arith.constant 0 : i32
    %c0_i32_1 = arith.constant 0 : i32
    return %c0_i32, %c0_i32_0 : i32, i32
  }
  func.func @transform_5(%arg0: i32) -> (i32, i32) {
    %c0_i32 = arith.constant 0 : i32
    %c0_i32_0 = arith.constant 0 : i32
    %c0_i32_1 = arith.constant 0 : i32
    return %c0_i32, %c0_i32_0 : i32, i32
  }
  func.func @transform_6(%arg0: i32) -> (i32, i32) {
    %c0_i32 = arith.constant 0 : i32
    %c0_i32_0 = arith.constant 0 : i32
    return %arg0, %c0_i32 : i32, i32
  }
  func.func @transform_7(%arg0: i32) -> (i32, i32) {
    %c0_i32 = arith.constant 0 : i32
    %c0_i32_0 = arith.constant 0 : i32
    %c0_i32_1 = arith.constant 0 : i32
    return %c0_i32, %c0_i32_0 : i32, i32
  }
  func.func @transform_8(%arg0: i32) -> (i32, i32) {
    %c0_i32 = arith.constant 0 : i32
    %c0_i32_0 = arith.constant 0 : i32
    %c0_i32_1 = arith.constant 0 : i32
    return %c0_i32, %c0_i32_0 : i32, i32
  }
  func.func @transform_9(%arg0: i32) -> (i32, i32) {
    %c0_i32 = arith.constant 0 : i32
    %c0_i32_0 = arith.constant 0 : i32
    return %arg0, %c0_i32 : i32, i32
  }
}

</mosaic_0001>

<bundles_post_ra>
// kernel: tpu_custom_call.1
= control target key start
LH: loop header
LB: loop body
LE: loop exit
PB: predicated region body
PF: predicated region fallthrough
CT: control target
= control target key end

     0   :  { %14 = vsyncpa [#allocation5], 0  ;;  %s3238_s0 = inlined_call_operand.vmem [shape: f32[32,8], index: 0, kind: input, shape index: {}]   ;;  %s3239_s1 = inlined_call_operand.vmem [shape: f32[32,8], index: 1, kind: input, shape index: {}]   ;;  %s3240_s2 = inlined_call_operand.vmem [shape: f32[8,32], index: 2, kind: input, shape index: {}]   ;;  %s3241_s3 = inlined_call_operand.vmem [shape: f32[32,8], index: 3, kind: input, shape index: {}]   ;;  %s3242_s4 = inlined_call_operand.vmem [shape: f32[32,8], index: 4, kind: input, shape index: {}]   ;;  %s3243_s5 = inlined_call_operand.vmem [shape: f32[1,32], index: 5, kind: input, shape index: {}]   ;;  %s3244_s6 = inlined_call_operand.vmem [shape: bf16[32,32], index: 6, kind: input, shape index: {}]   ;;  %s3245_s7 = inlined_call_operand.vmem [shape: f32[1,32], index: 7, kind: input, shape index: {}]   ;;  %s3246_s8 = inlined_call_operand.vmem [shape: f32[1,32], index: 8, kind: input, shape index: {}]   ;;  %s3247_s9 = inlined_call_operand.hbm [shape: f32[32,32], index: 9, kind: output, shape index: {}]  }
   0x1   :  { %16 = vsyncpa [#allocation5 + $0x1], 0  ;;  %s2765_s30 = smov 0   ;;  %s2767_s10 = smov 0  }
   0x2   :  { %s2769_s11 = smov 0   ;;  %s2771_s12 = smov 0  }
   0x3 LB: > { %s2786_s13 = sadd.s32 4294967295, %s2686_s12   ;;  %s2083_s14 = sadd.s32 4294967294, %s2686_s12   ;;  %s2686_s12 = sphi %s2771_s12, %s3255_s12   ;;  %s2682_s11 = sphi %s2769_s11, %s3254_s11   ;;  %s2678_s10 = sphi %s2767_s10, %s3253_s10   ;;  %s2674_s30 = sphi %s2765_s30, %s3252_s30  }
   0x4   : > { %s2790_s15 = sadd.s32 1, %s2686_s12   ;;  %s228_s16 = sadd.s32 1, %s2682_s11 }
   0x5   : > { %s225_s17 = ssub.s32 %s2686_s12, %s2790_s15  ;;  %p238_p0 = scmp.ne.s32.totalorder %s2682_s11, %s2678_s10 }
   0x6   : > { %p226_p1 = scmp.eq.s32.totalorder %s225_s17, 0  ;;  %p239_p2 = scmp.eq.s32.totalorder %s2786_s13, 1 }
   0x7   : > { %p244_p3 = scmp.ne.s32.totalorder %s2678_s10, %s2674_s30  ;;  %p245_p4 = scmp.eq.s32.totalorder %s2083_s14, 1 }
   0x8   : > { %s2801_s18 = scalar_select %p226_p1, %s2682_s11, %s228_s16  }
   0x9   : > { %p2803_p5 = por %p239_p2, %p238_p0  ;;  %p2807_p6 = por %p245_p4, %p244_p3 }
   0xa   : > { %p2086_p7 = scmp.ge.s32.totalorder %s2686_s12, 1  ;;  %p302_p8 = scmp.lt.s32.totalorder %s2686_s12, 3 }
   0xc   : > { %p303_p9 = pnand %p2086_p7, %p302_p8 }
   0xd   : > { %v360_v0 = vld [vmem:[%s3240_s2] sm:$0xff] (!%p303_p9)  ;;  %s2088_s23 = sshll.u32 (!%p303_p9), %s2786_s13, 1  ;;  %v357_v2 = vld [vmem:[%s3238_s0 + $0x8] sm:$0xff] (!%p303_p9)  ;;  %vm361_vm0 = vcmask (!%p303_p9), 64512   ;;  %v358_v4 = vld [vmem:[%s3238_s0 + $0x10] sm:$0xff] (!%p303_p9)  ;;  %v2688_v15 = vmov (!%p303_p9), 0.0|0.0   ;;  %v761_v59 = vlaneseq (!%p303_p9) }
   0xe   : > { %306 = sbr.rel (%p303_p9) target bundleno = 1553 (0x611), region = 56  ;;  %v356_v1 = vld [vmem:[%s3238_s0] sm:$0xff] (!%p303_p9)  ;;  %2209 = vmatprep.subr.mxu1 (!%p303_p9), %v360_v0  ;;  %p344_p10 = scmp.lt.s32.totalorder (!%p303_p9), %s2088_s23, 3  ;;  %2201 = vmatprep.subr.mxu0 (!%p303_p9), %v360_v0  ;;  %v665_v5 = vld [vmem:[%s3242_s4 + $0x8] sm:$0xff] (!%p303_p9)  ;;  %v666_v8 = vld [vmem:[%s3242_s4 + $0x10] sm:$0xff] (!%p303_p9)  ;;  %vm2689_vm1 = vmmov (!%p303_p9), 0  }
   0xf   : > { %v664_v3 = vld [vmem:[%s3242_s4] sm:$0xff] (!%p303_p9)  ;;  %2210 = vmatpush3.msra.mxu1 (!%p303_p9), %v360_v0  ;;  %2202 = vmatpush3.msra.mxu0 (!%p303_p9), %v360_v0  ;;  %v667_v9 = vld [vmem:[%s3242_s4 + $0x18] sm:$0xff] (!%p303_p9)  ;;  %v543_v14 = vld [vmem:[%s3241_s3 + $0x8] sm:$0xff] (!%p303_p9)  ;;  %v2690_v17 = vmov (!%p303_p9), 0.0   ;;  %v2691_v19 = vmov (!%p303_p9), 0   ;;  %vm578_vm2 = vcmask (!%p303_p9), 261120  }
  0x10   : > { %2203 = vmatprep.mubr.msk.f32.mxu0 (!%p303_p9), %vm361_vm0, %v356_v1  ;;  %v2332_v6 = vpack.c.bf16 (!%p303_p9), %v665_v5, %v664_v3  ;;  %v542_v7 = vld [vmem:[%s3241_s3] sm:$0xff] (!%p303_p9)  ;;  %v359_v10 = vld [vmem:[%s3238_s0 + $0x18] sm:$0xff] (!%p303_p9)  ;;  %v2336_v13 = vpack.c.bf16 (!%p303_p9), %v667_v9, %v666_v8  ;;  %2324 = vmatprep.subr.bf16.mxu0 (!%p303_p9), %v2688_v15  ;;  %v544_v16 = vld [vmem:[%s3241_s3 + $0x10] sm:$0xff] (!%p303_p9)  ;;  %s2692_s14 = smov (!%p303_p9), 120   ;;  %s2693_s16 = smov (!%p303_p9), 124   ;;  %v2696_v32 = vmov (!%p303_p9), 2  }
  0x11   : > { %2204 = vmatmul.mubr.msk.f32.vlgmr.msra.gmra.mrb[0].mxu0 (!%p303_p9), %vm361_vm0, %v357_v2  ;;  %546 = vxpose.xlu0.b32.start [1/4] (short) (narrow) (!%p303_p9), %v542_v7, 8  ;;  %v545_v18 = vld [vmem:[%s3241_s3 + $0x18] sm:$0xff] (!%p303_p9)  ;;  %vm2868_vm3 = vmpackc.low (!%p303_p9), %vm578_vm2, %vm578_vm2  ;;  %s2694_s17 = smov (!%p303_p9), 116   ;;  %s2695_s21 = smov (!%p303_p9), 112   ;;  %v2697_v51 = vmov (!%p303_p9), 1   ;;  %v2698_v52 = vmov (!%p303_p9), 7  }
  0x12   : > { %2206 = vmatprep.mubr.msk.f32.mxu0 (!%p303_p9), %vm361_vm0, %v358_v4  ;;  %2333 = vmatprep.subr.bf16.mxu1 (!%p303_p9), %v2332_v6  ;;  %v2699_v55 = vmov (!%p303_p9), 3   ;;  %v2700_v56 = vmov (!%p303_p9), 4   ;;  %v2701_v57 = vmov (!%p303_p9), 5   ;;  %v2702_v58 = vmov (!%p303_p9), 6   ;;  %s2705_s28 = smov (!%p303_p9), 100  }
  0x13   : > { %2494 = vset.pattern.permute.xlu1 (!%p303_p9), %v2691_v19  ;;  %v2904_v60 = vshrl.u32 (!%p303_p9), %v761_v59, 7  ;;  %vm882_vm4 = vcmask (!%p303_p9), 31744   ;;  %vm1032_vm5 = vcmask (!%p303_p9), 64544   ;;  %vm1182_vm6 = vcmask (!%p303_p9), 97344  }
  0x14   : > { %vm1332_vm7 = vcmask (!%p303_p9), 130144   ;;  %vm1482_vm8 = vcmask (!%p303_p9), 162944   ;;  %vm1632_vm9 = vcmask (!%p303_p9), 195744   ;;  %vm1782_vm10 = vcmask (!%p303_p9), 228544  }
  0x15   : > { %s3257_s23 = smov (!%p344_p10, %s2088_s23), 3  ;;  %2207 = vmatmul.mubr.msk.f32.gmra.mrb[2].mxu0 %vm361_vm0, %v359_v10  ;;  %547 = vxpose.xlu0.b32.cont [2/4] (short) (narrow) %v543_v14, 8  ;;  %v763_v61 = vsub.s32 0, %v2904_v60  ;;  %v895_v63 = vsub.s32 1, %v2904_v60  ;;  %v1045_v7 = vsub.s32 2, %v2904_v60  ;;  %vm1932_vm11 = vcmask 261344  }
  0x16   : > { %s2089_s29 = sshll.u32 %s3257_s23, 3  ;;  %2222 = vmatprep.mubr.msk.f32.mxu0 %vm2689_vm1, %v2690_v17  ;;  %s2091_s24 = sshll.u32 %s3257_s23, 2 }
  0x17   : > { %s347_s22 = scalar_lea.vmem %s3239_s1, %s2089_s29  ;;  %s353_s27 = scalar_lea.vmem %s3244_s6, %s2091_s24 }
  0x18   : > { %v459_v11 = vld [vmem:[%s347_s22] sm:$0xff]  ;;  %v460_v12 = vld [vmem:[%s347_s22 + $0x8] sm:$0xff]  ;;  %s2703_s22 = smov 108   ;;  %s2704_s23 = smov 104  }
  0x19   : > { %2211 = vmatprep.mubr.msk.f32.mxu1 %vm361_vm0, %v459_v11  ;;  %548 = vxpose.xlu0.b32.cont [3/4] (short) (narrow) %v544_v16, 8  ;;  %v2915_v0 = vld [vmem:[%s353_s27] sm:$0xff]   ;;  %s2706_s29 = smov 4   ;;  %s2712_s24 = smov 28  }
  0x1a   : > { %2212 = vmatmul.mubr.msk.f32.vlgmr.msra.gmra.mrb[0].mxu1 %vm361_vm0, %v460_v12  ;;  %v2922_v4 = vunpack.c.h.bf16 %v2915_v0  ;;  %v1195_v12 = vsub.s32 3, %v2904_v60 }
  0x1b   : > { %2335 = vmatpush3.bf16.msra.mxu1 %v2332_v6 }
  0x1c   : > { %2337 = vmatprep.subr.bf16.mxu1 %v2336_v13 }
  0x1d   : > { %549 = vxpose.xlu0.b32.end [4/4] (short) (narrow) %v545_v18, 8 }
  0x1f   : > { %2339 = vmatpush3.bf16.msra.mxu1 %v2336_v13 }
  0x46   : > { %2524 = vset.pattern.permute.xlu0 %v2696_v32 }
  0x91   : > { %v562_v31 = vpop.trf.xlu0 }
  0xe4   : > { %v2205_v20 = vpop.f32.mrb[0].mxu0 }
  0xe5   : > { %v440_v21 = vpop.f32.mrb[1].mxu0 }
  0xe6   : > { %v2325_v23 = vpack.c.bf16 %v2205_v20, %v440_v21  ;;  %v2872_v24 = vpack.i.bf16 %v2205_v20, %v440_v21  ;;  %v1345_v21 = vsub.s32 4, %v2904_v60 }
  0xe8   : > { %2327 = vmatpush3.bf16.xpose.msk.msra.mxu0 %vm2868_vm3, %v2325_v23  ;;  %v2208_v25 = vpop.f32.mrb[2].mxu0  ;;  %2475 = vrot.lane.b32.xlu1 %v2872_v24, %s2692_s14 }
  0xe9   : > { %v450_v27 = vpop.f32.mrb[3].mxu0  ;;  %2328 = vmatprep.subr.bf16.mxu0 %v2688_v15  ;;  %2470 = vrot.lane.b32.xlu0 %v2872_v24, %s2693_s16 }
  0xea   : > { %v2329_v29 = vpack.c.bf16 %v2208_v25, %v450_v27  ;;  %v2878_v30 = vpack.i.bf16 %v2208_v25, %v450_v27  ;;  %2341 = vmatprep.subr.bf16.mxu1 %v2325_v23 }
  0xec   : > { %2480 = vrot.lane.b32.xlu1 %v2872_v24, %s2694_s17 }
  0xed   : > { %v2213_v26 = vpop.f32.mrb[0].mxu1  ;;  %2490 = vrot.lane.b32.xlu0 %v2878_v30, %s2692_s14  ;;  %s2707_s14 = smov 8  }
  0xee   : > { %v533_v28 = vpop.f32.mrb[1].mxu1 }
  0xef   : > { %2233 = vmatprep.mubr.msk.f32.mxu1 %vm578_vm2, %v533_v28 }
  0xf0   : > { %2234 = vmatmul.mubr.msk.f32.vlgmr.msra.gmra.mrb[2].mxu1 %vm578_vm2, %v2213_v26  ;;  %2331 = vmatpush3.bf16.xpose.msk.msra.mxu0 %vm2868_vm3, %v2329_v29 }
  0xf1   : > { %2343 = vmatpush3.bf16.msra.mxu1 %v2325_v23  ;;  %2485 = vrot.lane.b32.xlu1 %v2878_v30, %s2693_s16  ;;  %s2708_s16 = smov 12  }
  0xf2   : > { %2345 = vmatprep.subr.bf16.mxu1 %v2329_v29  ;;  %2509 = vrot.lane.b32.xlu0 %v2872_v24, %s2695_s21 }
  0xf5   : > { %2347 = vmatpush3.bf16.msra.mxu1 %v2329_v29 }
  0xf6   : > { %2520 = vrot.lane.b32.xlu0 %v2878_v30, %s2695_s21  ;;  %s2710_s21 = smov 20  }
  0xf7   : > { %2223 = vmatmul.mubr.msk.f32.vlgmr.msra.gmra.mrb[4].mxu0 %vm578_vm2, %v562_v31  ;;  %v1495_v31 = vsub.s32 5, %v2904_v60 }
 0x15a   : > { %v2476_v33 = vpop.permute.xlu1 %2475 }
 0x15b   : > { %v2471_v34 = vpop.permute.xlu0 %2470  ;;  %v2478_v35 = vunpack.i.h.bf16 %v2476_v33  ;;  %v2477_v36 = vunpack.i.l.bf16 %v2476_v33 }
 0x15c   : > { %v2473_v37 = vunpack.i.h.bf16 %v2471_v34  ;;  %v2472_v38 = vunpack.i.l.bf16 %v2471_v34 }
 0x15d   : > { %v2891_v39 = vpack.c.bf16 %v2478_v35, %v2477_v36 }
 0x15e   : > { %v2348_v40 = vpack.c.bf16 %v2473_v37, %v2472_v38  ;;  %v2481_v41 = vpop.permute.xlu1 %2480 }
 0x15f   : > { %2357 = vmatprep.subr.bf16.mxu1 %v2891_v39  ;;  %v2483_v42 = vunpack.i.h.bf16 %v2481_v41  ;;  %v2482_v43 = vunpack.i.l.bf16 %v2481_v41 }
 0x160   : > { %2349 = vmatprep.subr.bf16.mxu0 %v2348_v40 }
 0x161   : > { %2351 = vmatpush3.bf16.msra.mxu0 %v2348_v40  ;;  %v2894_v47 = vpack.c.bf16 %v2483_v42, %v2482_v43  ;;  %v1645_v40 = vsub.s32 6, %v2904_v60 }
 0x163   : > { %v2486_v44 = vpop.permute.xlu1 %2485 }
 0x164   : > { %v2488_v45 = vunpack.i.h.bf16 %v2486_v44  ;;  %v2487_v46 = vunpack.i.l.bf16 %v2486_v44 }
 0x166   : > { %v2352_v48 = vpack.c.bf16 %v2488_v45, %v2487_v46 }
 0x168   : > { %2353 = vmatprep.subr.bf16.mxu0 %v2352_v48 }
 0x169   : > { %2355 = vmatpush3.bf16.msra.mxu0 %v2352_v48  ;;  %v2969_v48 = vpop.permute.xlu0 %2490 }
 0x16a   : > { %2365 = vmatprep.subr.bf16.mxu0 %v2894_v47 }
 0x16d   : > { %v2981_v59 = vpop.permute.xlu0 %2509 }
 0x1c3   : > { %v2235_v49 = vpop.f32.mrb[2].mxu1 }
 0x1c4   : > { %758 = vperm.xlu1 %2494, %v2235_v49   ;;  %v740_v50 = vpop.f32.mrb[3].mxu1 }
 0x1c5   : > { %1036 = vperm.xlu0 %2524, %v740_v50  }
 0x1c8   : > { %2495 = vset.pattern.permute.xlu1 %v2697_v51 }
 0x1c9   : > { %890 = vperm.xlu1 %2495, %v2235_v49   ;;  %2555 = vset.pattern.permute.xlu0 %v2698_v52 }
 0x1ca   : > { %v2897_v53 = vpop.f32.mrb[4].mxu0 }
 0x1cb   : > { %v2224_v54 = vpop.f32.mrb[5].mxu0  ;;  %v2912_v62 = vrot.slane %v2897_v53, %v763_v61  ;;  %v2919_v3 = vrot.slane %v2897_v53, %v895_v63  ;;  %v1046_v13 = vrot.slane %v2897_v53, %v1045_v7  ;;  %v2934_v18 = vrot.slane %v2897_v53, %v1195_v12 }
 0x1cc   : > { %v2944_v27 = vrot.slane %v2897_v53, %v1345_v21  ;;  %v2954_v36 = vrot.slane %v2897_v53, %v1495_v31  ;;  %v2964_v45 = vrot.slane %v2897_v53, %v1645_v40 }
 0x1cd   : > { %2496 = vset.pattern.permute.xlu1 %v2696_v32 }
 0x1ce   : > { %1040 = vperm.xlu1 %2496, %v2235_v49  }
 0x1d2   : > { %2497 = vset.pattern.permute.xlu1 %v2699_v55 }
 0x1d3   : > { %1190 = vperm.xlu1 %2497, %v2235_v49  }
 0x1d7   : > { %2498 = vset.pattern.permute.xlu1 %v2700_v56 }
 0x1d8   : > { %1340 = vperm.xlu1 %2498, %v2235_v49  }
 0x1dc   : > { %2499 = vset.pattern.permute.xlu1 %v2701_v57 }
 0x1dd   : > { %1490 = vperm.xlu1 %2499, %v2235_v49  }
 0x1e1   : > { %2500 = vset.pattern.permute.xlu1 %v2702_v58 }
 0x1e2   : > { %1640 = vperm.xlu1 %2500, %v2235_v49  }
 0x1e6   : > { %2501 = vset.pattern.permute.xlu1 %v2698_v52 }
 0x1e7   : > { %1790 = vperm.xlu1 %2501, %v2235_v49  }
 0x1eb   : > { %2502 = vset.pattern.permute.xlu1 %v2691_v19 }
 0x1ec   : > { %753 = vperm.xlu1 %2502, %v740_v50  }
 0x1f0   : > { %2504 = vrot.lane.b32.xlu1 %v2878_v30, %s2694_s17  ;;  %s2709_s17 = smov 16  }
 0x1f1   : > { %2513 = vset.pattern.permute.xlu1 %v2697_v51 }
 0x1f4   : > { %886 = vperm.xlu1 %2513, %v740_v50  }
 0x1f8   : > { %2515 = vrot.lane.b32.xlu1 %v2872_v24, %s2703_s22 }
 0x1f9   : > { %2525 = vset.pattern.permute.xlu1 %v2699_v55 }
 0x1fc   : > { %1186 = vperm.xlu1 %2525, %v740_v50  }
 0x200   : > { %2526 = vset.pattern.permute.xlu1 %v2700_v56 }
 0x201   : > { %1336 = vperm.xlu1 %2526, %v740_v50  }
 0x205   : > { %2527 = vset.pattern.permute.xlu1 %v2701_v57 }
 0x206   : > { %1486 = vperm.xlu1 %2527, %v740_v50  }
 0x20a   : > { %2528 = vset.pattern.permute.xlu1 %v2702_v58 }
 0x20b   : > { %1636 = vperm.xlu1 %2528, %v740_v50  }
 0x20f   : > { %2529 = vset.pattern.permute.xlu1 %v2698_v52 }
 0x210   : > { %1786 = vperm.xlu1 %2529, %v740_v50   ;;  %v1795_v50 = vsub.s32 7, %v2904_v60 }
 0x212   : > { %v2976_v56 = vrot.slane %v2897_v53, %v1795_v50 }
 0x243   : > { %v759_v1 = vpop.permute.xlu1 %758 }
 0x244   : > { %v766_v2 = vadd.f32 %v2912_v62, %v759_v1 }
 0x246   : > { %v768_v5 = vmul.f32 0.2, %v766_v2 }
 0x248   : > { %v770_v6 = vmax.f32 %v766_v2, %v768_v5  ;;  %v891_v8 = vpop.permute.xlu1 %890  ;;  %v2987_v2 = vpop.permute.xlu0 %2520 }
 0x249   : > { %v898_v9 = vadd.f32 %v2919_v3, %v891_v8 }
 0x24a   : > { %v2927_v10 = vadd.f32 %v2922_v4, %v770_v6 }
 0x24b   : > { %v900_v11 = vmul.f32 0.2, %v898_v9 }
 0x24c   : > { %v778_v14 = vsel %vm578_vm2, %v2927_v10, -inf  ;;  %v1037_v8 = vpop.permute.xlu0 %1036 }
 0x24d   : > { %v902_v15 = vmax.f32 %v898_v9, %v900_v11  ;;  %v1041_v16 = vpop.permute.xlu1 %1040  ;;  %779 = vmax.xlane.f32.xlu1 %v778_v14  ;;  %v2996_v14 = vunpack.c.l.bf16 %v2915_v0 }
 0x24e   : > { %v1048_v17 = vadd.f32 %v1046_v13, %v1041_v16 }
 0x24f   : > { %v2937_v19 = vadd.f32 %v2922_v4, %v902_v15  ;;  %v1047_v15 = vadd.f32 %v1046_v13, %v1037_v8 }
 0x250   : > { %v1050_v20 = vmul.f32 0.2, %v1048_v17 }
 0x251   : > { %v908_v22 = vsel %vm578_vm2, %v2937_v19, -inf }
 0x252   : > { %v1052_v23 = vmax.f32 %v1048_v17, %v1050_v20  ;;  %v1191_v25 = vpop.permute.xlu1 %1190  ;;  %909 = vmax.xlane.f32.xlu0 %v908_v22 }
 0x253   : > { %v1198_v26 = vadd.f32 %v2934_v18, %v1191_v25 }
 0x254   : > { %v2947_v28 = vadd.f32 %v2922_v4, %v1052_v23 }
 0x255   : > { %v1200_v29 = vmul.f32 0.2, %v1198_v26 }
 0x256   : > { %v1058_v32 = vsel %vm578_vm2, %v2947_v28, -inf }
 0x257   : > { %v1202_v33 = vmax.f32 %v1198_v26, %v1200_v29  ;;  %v1341_v34 = vpop.permute.xlu1 %1340  ;;  %1059 = vmax.xlane.f32.xlu1 %v1058_v32 }
 0x258   : > { %v1348_v35 = vadd.f32 %v2944_v27, %v1341_v34 }
 0x259   : > { %v2957_v37 = vadd.f32 %v2922_v4, %v1202_v33 }
 0x25a   : > { %v1350_v38 = vmul.f32 0.2, %v1348_v35 }
 0x25b   : > { %v1208_v41 = vsel %vm578_vm2, %v2957_v37, -inf }
 0x25c   : > { %v1352_v42 = vmax.f32 %v1348_v35, %v1350_v38  ;;  %v1491_v43 = vpop.permute.xlu1 %1490  ;;  %1209 = vmax.xlane.f32.xlu1 %v1208_v41 }
 0x25d   : > { %v1498_v44 = vadd.f32 %v2954_v36, %v1491_v43 }
 0x25e   : > { %v2967_v46 = vadd.f32 %v2922_v4, %v1352_v42 }
 0x25f   : > { %v1500_v49 = vmul.f32 0.2, %v1498_v44 }
 0x260   : > { %v1358_v51 = vsel %vm578_vm2, %v2967_v46, -inf }
 0x261   : > { %v1502_v52 = vmax.f32 %v1498_v44, %v1500_v49  ;;  %v1641_v54 = vpop.permute.xlu1 %1640  ;;  %1359 = vmax.xlane.f32.xlu1 %v1358_v51 }
 0x262   : > { %v1648_v55 = vadd.f32 %v2964_v45, %v1641_v54 }
 0x263   : > { %v2979_v57 = vadd.f32 %v2922_v4, %v1502_v52 }
 0x264   : > { %v1650_v58 = vmul.f32 0.2, %v1648_v55 }
 0x266   : > { %v1652_v61 = vmax.f32 %v1648_v55, %v1650_v58  ;;  %v1791_v63 = vpop.permute.xlu1 %1790 }
 0x267   : > { %v1798_v60 = vadd.f32 %v2976_v56, %v1791_v63 }
 0x268   : > { %v2985_v1 = vadd.f32 %v2922_v4, %v1652_v61 }
 0x269   : > { %v1800_v5 = vmul.f32 0.2, %v1798_v60 }
 0x26b   : > { %v1802_v6 = vmax.f32 %v1798_v60, %v1800_v5  ;;  %v754_v7 = vpop.permute.xlu1 %753  ;;  %v1508_v5 = vsel %vm578_vm2, %v2979_v57, -inf }
 0x26c   : > { %v765_v53 = vadd.f32 %v2912_v62, %v754_v7  ;;  %v1049_v62 = vmul.f32 0.2, %v1047_v15 }
 0x26d   : > { %v2991_v9 = vadd.f32 %v2922_v4, %v1802_v6 }
 0x26e   : > { %v767_v11 = vmul.f32 0.2, %v765_v53  ;;  %v1051_v0 = vmax.f32 %v1047_v15, %v1049_v62 }
 0x26f   : > { %v2993_v12 = vpop.permute.xlu1 %2504  ;;  %v1808_v6 = vsel %vm578_vm2, %v2991_v9, -inf }
 0x270   : > { %v769_v16 = vmax.f32 %v765_v53, %v767_v11 }
 0x272   : > { %2531 = vrot.lane.b32.xlu1 %v2878_v30, %s2703_s22  ;;  %v3001_v17 = vadd.f32 %v2996_v14, %v769_v16  ;;  %s2711_s22 = smov 24  }
 0x273   : > { %v887_v20 = vpop.permute.xlu1 %886 }
 0x274   : > { %v897_v21 = vadd.f32 %v2919_v3, %v887_v20  ;;  %v775_v4 = vsel %vm578_vm2, %v3001_v17, -inf  ;;  %v3015_v3 = vadd.f32 %v2996_v14, %v1051_v0 }
 0x275   : > { %776 = vmax.xlane.f32.xlu0 %v775_v4 }
 0x276   : > { %v899_v22 = vmul.f32 0.2, %v897_v21  ;;  %v1055_v35 = vsel %vm578_vm2, %v3015_v3, -inf }
 0x277   : > { %v3006_v23 = vpop.permute.xlu1 %2515 }
 0x278   : > { %v901_v13 = vmax.f32 %v897_v21, %v899_v22 }
 0x27a   : > { %v3009_v25 = vadd.f32 %v2996_v14, %v901_v13 }
 0x27b   : > { %v1187_v26 = vpop.permute.xlu1 %1186 }
 0x27c   : > { %v1197_v29 = vadd.f32 %v2934_v18, %v1187_v26  ;;  %v905_v31 = vsel %vm578_vm2, %v3009_v25, -inf }
 0x27d   : > { %906 = vmax.xlane.f32.xlu0 %v905_v31 }
 0x27e   : > { %v1199_v32 = vmul.f32 0.2, %v1197_v29 }
 0x280   : > { %v1201_v33 = vmax.f32 %v1197_v29, %v1199_v32  ;;  %v1337_v34 = vpop.permute.xlu1 %1336 }
 0x281   : > { %v1347_v38 = vadd.f32 %v2944_v27, %v1337_v34  ;;  %1056 = vmax.xlane.f32.xlu0 %v1055_v35 }
 0x282   : > { %v3021_v40 = vadd.f32 %v2996_v14, %v1201_v33 }
 0x283   : > { %v1349_v18 = vmul.f32 0.2, %v1347_v38 }
 0x284   : > { %v1205_v41 = vsel %vm578_vm2, %v3021_v40, -inf }
 0x285   : > { %v1351_v42 = vmax.f32 %v1347_v38, %v1349_v18  ;;  %1206 = vmax.xlane.f32.xlu0 %v1205_v41  ;;  %v1487_v43 = vpop.permute.xlu1 %1486 }
 0x286   : > { %v1497_v44 = vadd.f32 %v2954_v36, %v1487_v43 }
 0x287   : > { %v3027_v49 = vadd.f32 %v2996_v14, %v1351_v42 }
 0x288   : > { %v1499_v50 = vmul.f32 0.2, %v1497_v44 }
 0x289   : > { %v1355_v27 = vsel %vm578_vm2, %v3027_v49, -inf }
 0x28a   : > { %v1501_v51 = vmax.f32 %v1497_v44, %v1499_v50  ;;  %1356 = vmax.xlane.f32.xlu0 %v1355_v27  ;;  %v1637_v52 = vpop.permute.xlu1 %1636 }
 0x28b   : > { %v1647_v54 = vadd.f32 %v2964_v45, %v1637_v52  ;;  %v1658_v45 = vsel %vm578_vm2, %v2985_v1, -inf }
 0x28c   : > { %v3033_v55 = vadd.f32 %v2996_v14, %v1501_v51 }
 0x28d   : > { %v1649_v58 = vmul.f32 0.2, %v1647_v54 }
 0x28e   : > { %v1505_v61 = vsel %vm578_vm2, %v3033_v55, -inf }
 0x28f   : > { %v1651_v36 = vmax.f32 %v1647_v54, %v1649_v58  ;;  %1506 = vmax.xlane.f32.xlu0 %v1505_v61  ;;  %v1787_v7 = vpop.permute.xlu1 %1786 }
 0x290   : > { %v1797_v53 = vadd.f32 %v2976_v56, %v1787_v7 }
 0x291   : > { %v3038_v63 = vadd.f32 %v2996_v14, %v1651_v36 }
 0x292   : > { %v1799_v8 = vmul.f32 0.2, %v1797_v53 }
 0x293   : > { %v1655_v60 = vsel %vm578_vm2, %v3038_v63, -inf }
 0x294   : > { %1656 = vmax.xlane.f32.xlu0 %v1655_v60  ;;  %v1801_v11 = vmax.f32 %v1797_v53, %v1799_v8  ;;  %v2512_v53 = vunpack.i.h.bf16 %v2981_v59  ;;  %v2511_v8 = vunpack.i.l.bf16 %v2981_v59 }
 0x296   : > { %1509 = vmax.xlane.f32.xlu1 %v1508_v5  ;;  %v3053_v15 = vadd.f32 %v2996_v14, %v1801_v11  ;;  %v2493_v5 = vunpack.i.h.bf16 %v2969_v48 }
 0x298   : > { %v1805_v16 = vsel %vm578_vm2, %v3053_v15, -inf }
 0x29a   : > { %1659 = vmax.xlane.f32.xlu1 %v1658_v45 }
 0x29e   : > { %1809 = vmax.xlane.f32.xlu1 %v1808_v6 }
 0x2aa   : > { %2536 = vrot.lane.b32.xlu0 %v2872_v24, %s2704_s23 }
 0x2af   : > { %2541 = vrot.lane.b32.xlu1 %v2872_v24, %s2705_s28 }
 0x2b3   : > { %2551 = vrot.lane.b32.xlu1 %v2878_v30, %s2705_s28  ;;  %s340_s28 = sand.u32 1, %s2678_s10  }
 0x2c9   : > { %1806 = vmax.xlane.f32.xlu0 %v1805_v16 }
 0x2da   : > { %v780_v20 = vpop.xlane.xlu1 %779 }
 0x2db   : > { %v782_v62 = vsub.f32 %v2927_v10, %v780_v20  ;;  %v2507_v20 = vunpack.i.h.bf16 %v2993_v12 }
 0x2dd   : > { %v785_v21 = vmul.f32 1.442695, %v782_v62  ;;  %v2506_v62 = vunpack.i.l.bf16 %v2993_v12  ;;  %v2517_v12 = vunpack.i.l.bf16 %v3006_v23 }
 0x2df   : > { %2556 = vpow2.f32 %v785_v21  ;;  %v910_v24 = vpop.xlane.xlu0 %909  ;;  %2546 = vrot.lane.b32.xlu0 %v2878_v30, %s2704_s23  ;;  %s3196_s23 = scalar_lea.sflag [#allocation5], %s340_s28 }
 0x2e0   : > { %v912_v4 = vsub.f32 %v2937_v19, %v910_v24 }
 0x2e2   : > { %v915_v56 = vmul.f32 1.442695, %v912_v4 }
 0x2e4   : > { %v1060_v22 = vpop.xlane.xlu1 %1059  ;;  %2558 = vpow2.f32 %v915_v56 }
 0x2e5   : > { %v1062_v14 = vsub.f32 %v2947_v28, %v1060_v22  ;;  %v2368_v22 = vpack.c.bf16 %v2507_v20, %v2506_v62 }
 0x2e7   : > { %v1065_v13 = vmul.f32 1.442695, %v1062_v14  ;;  %v2518_v14 = vunpack.i.h.bf16 %v3006_v23 }
 0x2e9   : > { %v2557_v0 = vpop.eup %2556  ;;  %v1210_v26 = vpop.xlane.xlu1 %1209  ;;  %2560 = vpow2.f32 %v1065_v13  ;;  %v2380_v23 = vpack.c.bf16 %v2518_v14, %v2517_v12 }
 0x2ea   : > { %788 = vst.msk [vmem:[#allocation2 + $0x8] sm:$0xff] %vm578_vm2, %v2557_v0  ;;  %v1212_v10 = vsub.f32 %v2957_v37, %v1210_v26  ;;  %v2523_v26 = vunpack.i.h.bf16 %v2987_v2 }
 0x2ec   : > { %v1215_v30 = vmul.f32 1.442695, %v1212_v10 }
 0x2ee   : > { %v2559_v29 = vpop.eup %2558  ;;  %v1360_v19 = vpop.xlane.xlu1 %1359  ;;  %2562 = vpow2.f32 %v1215_v30  ;;  %v2522_v30 = vunpack.i.l.bf16 %v2987_v2 }
 0x2ef   : > { %v1362_v32 = vsub.f32 %v2967_v46, %v1360_v19 }
 0x2f1   : > { %v3063_v31 = vld [vmem:[#allocation2 + $0x8] sm:$0xff]  ;;  %v1365_v35 = vmul.f32 1.442695, %v1362_v32 }
 0x2f2   : > { %918 = vst.msk [vmem:[#allocation2 + $0x8] sm:$0xff] %vm578_vm2, %v2559_v29  ;;  %v3103_v59 = vpop.permute.xlu1 %2531 }
 0x2f3   : > { %v2561_v33 = vpop.eup %2560  ;;  %2564 = vpow2.f32 %v1365_v35 }
 0x2f8   : > { %v2563_v37 = vpop.eup %2562 }
 0x2f9   : > { %v3067_v28 = vld [vmem:[#allocation2 + $0x8] sm:$0xff] }
 0x2fa   : > { %v924_v34 = vsel %vm578_vm2, %v3067_v28, 0.0  ;;  %1068 = vst.msk [vmem:[#allocation2 + $0x8] sm:$0xff] %vm578_vm2, %v2561_v33 }
 0x2fb   : > { %925 = vadd.xlane.f32.xlu1 %v924_v34  ;;  %v2376_v34 = vpack.c.bf16 %v2523_v26, %v2522_v30 }
 0x2fd   : > { %v2565_v42 = vpop.eup %2564 }
 0x301   : > { %v3072_v38 = vld [vmem:[#allocation2 + $0x8] sm:$0xff] }
 0x302   : > { %v777_v18 = vpop.xlane.xlu0 %776  ;;  %1218 = vst.msk [vmem:[#allocation2 + $0x8] sm:$0xff] %vm578_vm2, %v2563_v37  ;;  %v1074_v29 = vsel %vm578_vm2, %v3072_v38, 0.0 }
 0x303   : > { %v781_v41 = vsub.f32 %v3001_v17, %v777_v18 }
 0x305   : > { %v783_v46 = vmul.f32 1.442695, %v781_v41  ;;  %v2534_v41 = vunpack.i.h.bf16 %v3103_v59 }
 0x307   : > { %2566 = vpow2.f32 %v783_v46  ;;  %v2533_v46 = vunpack.i.l.bf16 %v3103_v59 }
 0x309   : > { %v3076_v43 = vld [vmem:[#allocation2 + $0x8] sm:$0xff] }
 0x30a   : > { %v907_v44 = vpop.xlane.xlu0 %906  ;;  %v1224_v50 = vsel %vm578_vm2, %v3076_v43, 0.0  ;;  %1368 = vst.msk [vmem:[#allocation2 + $0x8] sm:$0xff] %vm578_vm2, %v2565_v42 }
 0x30b   : > { %v911_v27 = vsub.f32 %v3009_v25, %v907_v44  ;;  %1225 = vadd.xlane.f32.xlu1 %v1224_v50  ;;  %v2492_v25 = vunpack.i.l.bf16 %v2969_v48 }
 0x30d   : > { %v913_v51 = vmul.f32 1.442695, %v911_v27  ;;  %v2360_v11 = vpack.c.bf16 %v2493_v5, %v2492_v25 }
 0x30e   : > { %v1057_v52 = vpop.xlane.xlu0 %1056 }
 0x30f   : > { %2568 = vpow2.f32 %v913_v51  ;;  %v1061_v54 = vsub.f32 %v3015_v3, %v1057_v52 }
 0x311   : > { %v2567_v17 = vpop.eup %2566  ;;  %v3083_v58 = vld [vmem:[#allocation2 + $0x8] sm:$0xff]  ;;  %v1063_v60 = vmul.f32 1.442695, %v1061_v54 }
 0x312   : > { %787 = vst.msk [vmem:[#allocation2] sm:$0xff] %vm578_vm2, %v2567_v17  ;;  %v1207_v61 = vpop.xlane.xlu0 %1206  ;;  %v1374_v36 = vsel %vm578_vm2, %v3083_v58, 0.0  ;;  %v2384_v17 = vpack.c.bf16 %v2534_v41, %v2533_v46 }
 0x313   : > { %1375 = vadd.xlane.f32.xlu1 %v1374_v36  ;;  %2570 = vpow2.f32 %v1063_v60  ;;  %v1211_v45 = vsub.f32 %v3021_v40, %v1207_v61  ;;  %v2372_v40 = vpack.c.bf16 %v2512_v53, %v2511_v8 }
 0x315   : > { %v1213_v16 = vmul.f32 1.442695, %v1211_v45 }
 0x317   : > { %v1357_v6 = vpop.xlane.xlu0 %1356  ;;  %2572 = vpow2.f32 %v1213_v16 }
 0x318   : > { %v1361_v21 = vsub.f32 %v3027_v49, %v1357_v6 }
 0x319   : > { %v2569_v3 = vpop.eup %2568  ;;  %v3091_v7 = vld [vmem:[#allocation2] sm:$0xff] }
 0x31a   : > { %2244 = vmatprep.mubr.msk.f32.mxu1 %vm578_vm2, %v3091_v7  ;;  %917 = vst.msk [vmem:[#allocation2] sm:$0xff] %vm578_vm2, %v2569_v3  ;;  %v1363_v0 = vmul.f32 1.442695, %v1361_v21 }
 0x31b   : > { %2245 = vmatmul.mubr.msk.f32.vlgmr.msra.gmra.mrb[4].mxu1 %vm578_vm2, %v3063_v31 }
 0x31c   : > { %2359 = vmatpush3.bf16.msra.mxu1 %v2891_v39  ;;  %v1507_v48 = vpop.xlane.xlu0 %1506  ;;  %2574 = vpow2.f32 %v1363_v0 }
 0x31d   : > { %2361 = vmatprep.subr.bf16.mxu1 %v2360_v11  ;;  %v2571_v24 = vpop.eup %2570  ;;  %v1511_v19 = vsub.f32 %v3033_v55, %v1507_v48 }
 0x31f   : > { %v1513_v35 = vmul.f32 1.442695, %v1511_v19 }
 0x320   : > { %2363 = vmatpush3.bf16.msra.mxu1 %v2360_v11 }
 0x321   : > { %2373 = vmatprep.subr.bf16.mxu1 %v2372_v40  ;;  %v919_v4 = vld [vmem:[#allocation2] sm:$0xff]  ;;  %v1657_v56 = vpop.xlane.xlu0 %1656 }
 0x322   : > { %2255 = vmatprep.mubr.msk.f32.mxu0 %vm578_vm2, %v919_v4  ;;  %1067 = vst.msk [vmem:[#allocation2] sm:$0xff] %vm578_vm2, %v2571_v24  ;;  %v921_v39 = vsel %vm578_vm2, %v919_v4, 0.0  ;;  %v1661_v42 = vsub.f32 %v3038_v63, %v1657_v56 }
 0x323   : > { %922 = vadd.xlane.f32.xlu0 %v921_v39  ;;  %2256 = vmatmul.mubr.msk.f32.vlgmr.msra.gmra.mrb[6].mxu0 %vm578_vm2, %v3067_v28  ;;  %v1510_v49 = vpop.xlane.xlu1 %1509  ;;  %v794_v39 = vsel %vm578_vm2, %v3063_v31, 0.0 }
 0x324   : > { %2367 = vmatpush3.bf16.msra.mxu0 %v2894_v47  ;;  %v1512_v13 = vsub.f32 %v2979_v57, %v1510_v49  ;;  %v2573_v57 = vpop.eup %2572  ;;  %v1663_v61 = vmul.f32 1.442695, %v1661_v42 }
 0x325   : > { %2369 = vmatprep.subr.bf16.mxu0 %v2368_v22  ;;  %v2537_v33 = vpop.permute.xlu0 %2536 }
 0x326   : > { %v1515_v10 = vmul.f32 1.442695, %v1512_v13  ;;  %v2539_v37 = vunpack.i.h.bf16 %v2537_v33  ;;  %v2538_v55 = vunpack.i.l.bf16 %v2537_v33  ;;  %v2575_v51 = vpop.eup %2574 }
 0x327   : > { %1075 = vadd.xlane.f32.xlu0 %v1074_v29  ;;  %v1660_v32 = vpop.xlane.xlu1 %1659 }
 0x328   : > { %2576 = vpow2.f32 %v1515_v10  ;;  %v1662_v47 = vsub.f32 %v2985_v1, %v1660_v32  ;;  %2371 = vmatpush3.bf16.msra.mxu0 %v2368_v22  ;;  %v2388_v44 = vpack.c.bf16 %v2539_v37, %v2538_v55 }
 0x329   : > { %2381 = vmatprep.subr.bf16.mxu0 %v2380_v23  ;;  %v1069_v28 = vld [vmem:[#allocation2] sm:$0xff]  ;;  %2578 = vpow2.f32 %v1513_v35 }
 0x32a   : > { %2266 = vmatprep.mubr.msk.f32.mxu1 %vm578_vm2, %v1069_v28  ;;  %1217 = vst.msk [vmem:[#allocation2] sm:$0xff] %vm578_vm2, %v2573_v57  ;;  %v1071_v2 = vsel %vm578_vm2, %v1069_v28, 0.0  ;;  %v1665_v1 = vmul.f32 1.442695, %v1662_v47 }
 0x32b   : > { %2267 = vmatmul.mubr.msk.f32.vlgmr.msra.gmra.mrb[6].mxu1 %vm578_vm2, %v3072_v38  ;;  %1072 = vadd.xlane.f32.xlu0 %v1071_v2  ;;  %v1810_v18 = vpop.xlane.xlu1 %1809 }
 0x32c   : > { %2375 = vmatpush3.bf16.msra.mxu1 %v2372_v40  ;;  %2580 = vpow2.f32 %v1665_v1  ;;  %v1812_v50 = vsub.f32 %v2991_v9, %v1810_v18 }
 0x32d   : > { %2377 = vmatprep.subr.bf16.mxu1 %v2376_v34  ;;  %2582 = vpow2.f32 %v1663_v61 }
 0x32e   : > { %v1815_v9 = vmul.f32 1.442695, %v1812_v50 }
 0x32f   : > { %v2542_v27 = vpop.permute.xlu1 %2541 }
 0x330   : > { %2379 = vmatpush3.bf16.msra.mxu1 %v2376_v34  ;;  %v2544_v63 = vunpack.i.h.bf16 %v2542_v27  ;;  %v2543_v36 = vunpack.i.l.bf16 %v2542_v27  ;;  %2584 = vpow2.f32 %v1815_v9 }
 0x331   : > { %2389 = vmatprep.subr.bf16.mxu1 %v2388_v44  ;;  %v1219_v38 = vld [vmem:[#allocation2] sm:$0xff] }
 0x332   : > { %v2577_v52 = vpop.eup %2576  ;;  %2277 = vmatprep.mubr.msk.f32.mxu0 %vm578_vm2, %v1219_v38  ;;  %1367 = vst.msk [vmem:[#allocation2] sm:$0xff] %vm578_vm2, %v2575_v51  ;;  %v1221_v54 = vsel %vm578_vm2, %v1219_v38, 0.0  ;;  %v2396_v60 = vpack.c.bf16 %v2544_v63, %v2543_v36 }
 0x333   : > { %1518 = vst.msk [vmem:[#allocation2 + $0x8] sm:$0xff] %vm578_vm2, %v2577_v52  ;;  %1222 = vadd.xlane.f32.xlu0 %v1221_v54  ;;  %2278 = vmatmul.mubr.msk.f32.vlgmr.msra.gmra.mrb[8].mxu0 %vm578_vm2, %v3076_v43  ;;  %v2579_v5 = vpop.eup %2578  ;;  %v2552_v53 = vpop.permute.xlu1 %2551 }
 0x334   : > { %2383 = vmatpush3.bf16.msra.mxu0 %v2380_v23  ;;  %v2554_v8 = vunpack.i.h.bf16 %v2552_v53  ;;  %v2553_v11 = vunpack.i.l.bf16 %v2552_v53 }
 0x335   : > { %2385 = vmatprep.subr.bf16.mxu0 %v2384_v17 }
 0x336   : > { %v2581_v45 = vpop.eup %2580 }
 0x337   : > { %v2583_v16 = vpop.eup %2582 }
 0x338   : > { %2387 = vmatpush3.bf16.msra.mxu0 %v2384_v17 }
 0x339   : > { %2397 = vmatprep.subr.bf16.mxu0 %v2396_v60  ;;  %v1369_v25 = vld [vmem:[#allocation2] sm:$0xff] }
 0x33a   : > { %2288 = vmatprep.mubr.msk.f32.mxu1 %vm578_vm2, %v1369_v25  ;;  %1517 = vst.msk [vmem:[#allocation2] sm:$0xff] %vm578_vm2, %v2579_v5  ;;  %v1371_v6 = vsel %vm578_vm2, %v1369_v25, 0.0  ;;  %v1520_v3 = vld [vmem:[#allocation2 + $0x8] sm:$0xff]  ;;  %v2585_v40 = vpop.eup %2584 }
 0x33b   : > { %1372 = vadd.xlane.f32.xlu0 %v1371_v6  ;;  %2289 = vmatmul.mubr.msk.f32.vlgmr.msra.gmra.mrb[8].mxu1 %vm578_vm2, %v3083_v58  ;;  %v1524_v43 = vsel %vm578_vm2, %v1520_v3, 0.0  ;;  %1668 = vst.msk [vmem:[#allocation2 + $0x8] sm:$0xff] %vm578_vm2, %v2581_v45  ;;  %v2400_v58 = vpack.c.bf16 %v2554_v8, %v2553_v11 }
 0x33c   : > { %2391 = vmatpush3.bf16.msra.mxu1 %v2388_v44  ;;  %1525 = vadd.xlane.f32.xlu1 %v1524_v43 }
 0x341   : > { %v1519_v48 = vld [vmem:[#allocation2] sm:$0xff] }
 0x342   : > { %2299 = vmatprep.mubr.msk.f32.mxu0 %vm578_vm2, %v1519_v48  ;;  %1667 = vst.msk [vmem:[#allocation2] sm:$0xff] %vm578_vm2, %v2583_v16  ;;  %v1521_v20 = vsel %vm578_vm2, %v1519_v48, 0.0  ;;  %v1670_v62 = vld [vmem:[#allocation2 + $0x8] sm:$0xff] }
 0x343   : > { %1522 = vadd.xlane.f32.xlu0 %v1521_v20  ;;  %2300 = vmatmul.mubr.msk.f32.vlgmr.msra.gmra.mrb[10].mxu0 %vm578_vm2, %v1520_v3  ;;  %v1674_v59 = vsel %vm578_vm2, %v1670_v62, 0.0  ;;  %1818 = vst.msk [vmem:[#allocation2 + $0x8] sm:$0xff] %vm578_vm2, %v2585_v40 }
 0x344   : > { %2399 = vmatpush3.bf16.msra.mxu0 %v2396_v60  ;;  %1675 = vadd.xlane.f32.xlu1 %v1674_v59 }
 0x345   : > { %2401 = vmatprep.subr.bf16.mxu0 %v2400_v58 }
 0x348   : > { %2403 = vmatpush3.bf16.msra.mxu0 %v2400_v58 }
 0x349   : > { %v1669_v21 = vld [vmem:[#allocation2] sm:$0xff] }
 0x34a   : > { %2310 = vmatprep.mubr.msk.f32.mxu1 %vm578_vm2, %v1669_v21  ;;  %v1671_v24 = vsel %vm578_vm2, %v1669_v21, 0.0  ;;  %v1820_v4 = vld [vmem:[#allocation2 + $0x8] sm:$0xff] }
 0x34b   : > { %1672 = vadd.xlane.f32.xlu0 %v1671_v24  ;;  %v1824_v56 = vsel %vm578_vm2, %v1820_v4, 0.0 }
 0x34c   : > { %1825 = vadd.xlane.f32.xlu1 %v1824_v56 }
 0x350   : > { %795 = vadd.xlane.f32.xlu1 %v794_v39 }
 0x356   : > { %v1807_v22 = vpop.xlane.xlu0 %1806 }
 0x357   : > { %v1811_v14 = vsub.f32 %v3053_v15, %v1807_v22  ;;  %v791_v15 = vsel %vm578_vm2, %v3091_v7, 0.0 }
 0x359   : > { %v1813_v12 = vmul.f32 1.442695, %v1811_v14 }
 0x35a   : > { %v2547_v0 = vpop.permute.xlu0 %2546 }
 0x35b   : > { %2586 = vpow2.f32 %v1813_v12  ;;  %v2549_v49 = vunpack.i.h.bf16 %v2547_v0  ;;  %v2548_v13 = vunpack.i.l.bf16 %v2547_v0 }
 0x35d   : > { %v2392_v26 = vpack.c.bf16 %v2549_v49, %v2548_v13 }
 0x35f   : > { %2393 = vmatprep.subr.bf16.mxu1 %v2392_v26 }
 0x360   : > { %2395 = vmatpush3.bf16.msra.mxu1 %v2392_v26 }
 0x363   : > { %2311 = vmatmul.mubr.msk.f32.vlgmr.msra.gmra.mrb[10].mxu1 %vm578_vm2, %v1670_v62 }
 0x365   : > { %v2587_v10 = vpop.eup %2586 }
 0x366   : > { %1817 = vst.msk [vmem:[#allocation2] sm:$0xff] %vm578_vm2, %v2587_v10 }
 0x36d   : > { %v1819_v29 = vld [vmem:[#allocation2] sm:$0xff] }
 0x36e   : > { %2321 = vmatprep.mubr.msk.f32.mxu0 %vm578_vm2, %v1819_v29  ;;  %v1821_v31 = vsel %vm578_vm2, %v1819_v29, 0.0 }
 0x36f   : > { %1822 = vadd.xlane.f32.xlu0 %v1821_v31  ;;  %2322 = vmatmul.mubr.msk.f32.vlgmr.msra.gmra.mrb[12].mxu0 %vm578_vm2, %v1820_v4 }
 0x373   : > { %792 = vadd.xlane.f32.xlu0 %v791_v15 }
 0x388   : > { %v926_v30 = vpop.xlane.xlu1 %925 }
 0x398   : > { %v1226_v23 = vpop.xlane.xlu1 %1225 }
 0x3a0   : > { %v1376_v19 = vpop.xlane.xlu1 %1375 }
 0x3b0   : > { %v923_v57 = vpop.xlane.xlu0 %922 }
 0x3b4   : > { %v1076_v2 = vpop.xlane.xlu0 %1075 }
 0x3b8   : > { %v1073_v34 = vpop.xlane.xlu0 %1072 }
 0x3c0   : > { %v1223_v35 = vpop.xlane.xlu0 %1222 }
 0x3c8   : > { %v1373_v1 = vpop.xlane.xlu0 %1372 }
 0x3c9   : > { %v1526_v32 = vpop.xlane.xlu1 %1525 }
 0x3d0   : > { %v1523_v41 = vpop.xlane.xlu0 %1522 }
 0x3d1   : > { %v3162_v33 = vpop.xlane.xlu1 %1675 }
 0x3d8   : > { %v1673_v51 = vpop.xlane.xlu0 %1672 }
 0x3d9   : > { %v3164_v47 = vpop.xlane.xlu1 %1825 }
 0x3dd   : > { %v796_v28 = vpop.xlane.xlu1 %795 }
 0x3de   : > { %2588 = vrcp.f32 %v796_v28 }
 0x3df   : > { %2590 = vrcp.f32 %v926_v30 }
 0x3e0   : > { %2592 = vrcp.f32 %v923_v57 }
 0x3e1   : > { %2594 = vrcp.f32 %v1076_v2 }
 0x3e2   : > { %2596 = vrcp.f32 %v1073_v34 }
 0x3e3   : > { %2598 = vrcp.f32 %v1226_v23 }
 0x3e4   : > { %2600 = vrcp.f32 %v1223_v35 }
 0x3e8   : > { %v2589_v37 = vpop.eup %2588 }
 0x3e9   : > { %v2591_v46 = vpop.eup %2590 }
 0x3ea   : > { %v2593_v44 = vpop.eup %2592 }
 0x3eb   : > { %v2595_v54 = vpop.eup %2594 }
 0x3ec   : > { %v2597_v9 = vpop.eup %2596 }
 0x3ed   : > { %v2599_v5 = vpop.eup %2598 }
 0x3ee   : > { %v2246_v55 = vpop.f32.mrb[4].mxu1  ;;  %v2601_v45 = vpop.eup %2600 }
 0x3ef   : > { %v881_v7 = vmul.f32 %v2589_v37, %v2246_v55  ;;  %v869_v18 = vpop.f32.mrb[5].mxu1 }
 0x3f1   : > { %884 = vst.msk [vmem:[#allocation3 + $0x8] sm:$0xff] %vm882_vm4, %v881_v7 }
 0x3f6   : > { %v2257_v42 = vpop.f32.mrb[6].mxu0 }
 0x3f7   : > { %v1023_v50 = vmul.f32 %v2591_v46, %v2257_v42  ;;  %v1011_v27 = vpop.f32.mrb[7].mxu0 }
 0x3f8   : > { %v1022_v38 = vmul.f32 %v2593_v44, %v1011_v27 }
 0x3f9   : > { %1028 = vrot.lane.b32.xlu1 %v1023_v50, %s2706_s29 }
 0x3fa   : > { %1026 = vrot.lane.b32.xlu0 %v1022_v38, %s2706_s29  ;;  %s2713_s29 = smov [#allocation4]  }
 0x3fc   : > { %v1823_v52 = vpop.xlane.xlu0 %1822 }
 0x3fe   : > { %v2268_v17 = vpop.f32.mrb[6].mxu1 }
 0x3ff   : > { %v1173_v61 = vmul.f32 %v2595_v54, %v2268_v17  ;;  %v1161_v63 = vpop.f32.mrb[7].mxu1 }
 0x400   : > { %v793_v36 = vpop.xlane.xlu0 %792  ;;  %v1172_v60 = vmul.f32 %v2597_v9, %v1161_v63 }
 0x401   : > { %2602 = vrcp.f32 %v793_v36  ;;  %1178 = vrot.lane.b32.xlu1 %v1173_v61, %s2707_s14 }
 0x402   : > { %2604 = vrcp.f32 %v1376_v19 }
 0x403   : > { %2606 = vrcp.f32 %v1373_v1 }
 0x404   : > { %2608 = vrcp.f32 %v1526_v32 }
 0x405   : > { %1176 = vrot.lane.b32.xlu1 %v1172_v60, %s2707_s14  ;;  %2610 = vrcp.f32 %v1523_v41 }
 0x406   : > { %v2279_v25 = vpop.f32.mrb[8].mxu0  ;;  %2612 = vrcp.f32 %v3162_v33 }
 0x407   : > { %v1323_v6 = vmul.f32 %v2599_v5, %v2279_v25  ;;  %v1311_v3 = vpop.f32.mrb[9].mxu0  ;;  %2614 = vrcp.f32 %v1673_v51 }
 0x408   : > { %v1322_v43 = vmul.f32 %v2601_v45, %v1311_v3  ;;  %2616 = vrcp.f32 %v3164_v47 }
 0x409   : > { %1328 = vrot.lane.b32.xlu1 %v1323_v6, %s2708_s16  ;;  %2618 = vrcp.f32 %v1823_v52 }
 0x40a   : > { %1326 = vrot.lane.b32.xlu0 %v1322_v43, %s2708_s16  ;;  %s2628_s16 = sshll.u32 %s2713_s29, 4  ;;  %s2629_s16 = int_to_ptr.vmem [resolvable:$false] %s2628_s16 }
 0x40b   : > { %v2603_v53 = vpop.eup %2602 }
 0x40c   : > { %v880_v8 = vmul.f32 %v2603_v53, %v869_v18  ;;  %v2605_v11 = vpop.eup %2604  ;;  %v2121_v18 = vld [vmem:[%s3243_s5] ss:$0 sm:$0xff] }
 0x40d   : > { %v2607_v48 = vpop.eup %2606  ;;  %v2122_v53 = vld [vmem:[%s3245_s7] ss:$0 sm:$0xff] }
 0x40e   : > { %v2290_v16 = vpop.f32.mrb[8].mxu1  ;;  %883 = vst.msk [vmem:[#allocation3] sm:$0xff] %vm882_vm4, %v880_v8  ;;  %v2609_v58 = vpop.eup %2608 }
 0x40f   : > { %v1473_v40 = vmul.f32 %v2605_v11, %v2290_v16  ;;  %v1461_v20 = vpop.f32.mrb[9].mxu1  ;;  %v2611_v21 = vpop.eup %2610  ;;  %v2123_v11 = vld [vmem:[%s3246_s8] ss:$0 sm:$0xff] }
 0x410   : > { %v1472_v62 = vmul.f32 %v2607_v48, %v1461_v20  ;;  %v2613_v39 = vpop.eup %2612 }
 0x411   : > { %1478 = vrot.lane.b32.xlu1 %v1473_v40, %s2709_s17  ;;  %v2615_v14 = vpop.eup %2614 }
 0x412   : > { %1476 = vrot.lane.b32.xlu0 %v1472_v62, %s2709_s17  ;;  %v2617_v13 = vpop.eup %2616  ;;  %s2087_s17 = sshll.u32 %s340_s28, 4 }
 0x413   : > { %v2619_v10 = vpop.eup %2618 }
 0x416   : > { %v2301_v59 = vpop.f32.mrb[10].mxu0 }
 0x417   : > { %v1623_v24 = vmul.f32 %v2609_v58, %v2301_v59  ;;  %v1611_v4 = vpop.f32.mrb[11].mxu0 }
 0x418   : > { %v1622_v56 = vmul.f32 %v2611_v21, %v1611_v4 }
 0x419   : > { %1628 = vrot.lane.b32.xlu1 %v1623_v24, %s2710_s21 }
 0x41a   : > { %1626 = vrot.lane.b32.xlu0 %v1622_v56, %s2710_s21  ;;  %s2129_s21 = sshll.u32 %s2786_s13, 8 }
 0x41b   : > { %s3191_s27 = scalar_lea.hbm %s3247_s9, %s2129_s21 }
 0x436   : > { %v2312_v22 = vpop.f32.mrb[10].mxu1 }
 0x437   : > { %v1773_v12 = vmul.f32 %v2613_v39, %v2312_v22  ;;  %v1761_v0 = vpop.f32.mrb[11].mxu1 }
 0x438   : > { %v1772_v49 = vmul.f32 %v2615_v14, %v1761_v0 }
 0x439   : > { %1778 = vrot.lane.b32.xlu1 %v1773_v12, %s2711_s22 }
 0x43a   : > { %1776 = vrot.lane.b32.xlu0 %v1772_v49, %s2711_s22  ;;  %s342_s22 = scalar_lea.vmem [#allocation4], %s2087_s17  ;;  %s2630_s17 = scalar_lea.vmem %s2629_s16, 512 }
 0x442   : > { %v2323_v26 = vpop.f32.mrb[12].mxu0 }
 0x443   : > { %v1923_v29 = vmul.f32 %v2617_v13, %v2323_v26  ;;  %v1911_v31 = vpop.f32.mrb[13].mxu0 }
 0x444   : > { %v1922_v15 = vmul.f32 %v2619_v10, %v1911_v31 }
 0x445   : > { %1928 = vrot.lane.b32.xlu1 %v1923_v29, %s2712_s24 }
 0x446   : > { %1926 = vrot.lane.b32.xlu0 %v1922_v15, %s2712_s24  ;;  %s2009_s24 = sshll.u32 %s342_s22, 4  ;;  %s3193_s24 = int_to_ptr.vmem [resolvable:$true] %s2009_s24 }
 0x447   : > { %s2624_s13 = scalar_lea.vmem %s3193_s24, 256  ;;  %p2631_p0 = scmp.lt.s32.totalorder %s3193_s24, %s2629_s16 }
 0x448   : > { %p2625_p11 = scmp.ne.s32.totalorder %s3193_s24, %s2624_s13  ;;  %p2632_p1 = scmp.lt.s32.totalorder %s2630_s17, %s2624_s13 }
 0x44a   : > { %p2626_p12 = pnand %p2625_p11, %p2803_p5  ;;  %p2633_p2 = por %p2632_p1, %p2631_p0 }
 0x44c   : > { %p2627_p13 = pneg %p2626_p12 }
 0x44e   : > { %p2634_p3 = pnand %p2633_p2, %p2627_p13 }
 0x46b   : > { %v1029_v30 = vpop.permute.xlu1 %1028 }
 0x46c   : > { %1034 = vst.msk [vmem:[#allocation3 + $0x8] sm:$0xff] %vm1032_vm5, %v1029_v30  ;;  %v1027_v23 = vpop.permute.xlu0 %1026 }
 0x46d   : > { %1033 = vst.msk [vmem:[#allocation3] sm:$0xff] %vm1032_vm5, %v1027_v23 }
 0x473   : > { %v1179_v19 = vpop.permute.xlu1 %1178 }
 0x474   : > { %1184 = vst.msk [vmem:[#allocation3 + $0x8] sm:$0xff] %vm1182_vm6, %v1179_v19 }
 0x477   : > { %v1177_v32 = vpop.permute.xlu1 %1176 }
 0x478   : > { %1183 = vst.msk [vmem:[#allocation3] sm:$0xff] %vm1182_vm6, %v1177_v32 }
 0x47b   : > { %v1329_v33 = vpop.permute.xlu1 %1328 }
 0x47c   : > { %1334 = vst.msk [vmem:[#allocation3 + $0x8] sm:$0xff] %vm1332_vm7, %v1329_v33  ;;  %v1327_v47 = vpop.permute.xlu0 %1326 }
 0x47d   : > { %1333 = vst.msk [vmem:[#allocation3] sm:$0xff] %vm1332_vm7, %v1327_v47 }
 0x483   : > { %v1479_v57 = vpop.permute.xlu1 %1478 }
 0x484   : > { %1484 = vst.msk [vmem:[#allocation3 + $0x8] sm:$0xff] %vm1482_vm8, %v1479_v57  ;;  %v1477_v28 = vpop.permute.xlu0 %1476 }
 0x485   : > { %1483 = vst.msk [vmem:[#allocation3] sm:$0xff] %vm1482_vm8, %v1477_v28 }
 0x48b   : > { %v1629_v2 = vpop.permute.xlu1 %1628 }
 0x48c   : > { %1634 = vst.msk [vmem:[#allocation3 + $0x8] sm:$0xff] %vm1632_vm9, %v1629_v2  ;;  %v1627_v34 = vpop.permute.xlu0 %1626 }
 0x48d   : > { %1633 = vst.msk [vmem:[#allocation3] sm:$0xff] %vm1632_vm9, %v1627_v34 }
 0x4ab   : > { %v1779_v35 = vpop.permute.xlu1 %1778 }
 0x4ac   : > { %1784 = vst.msk [vmem:[#allocation3 + $0x8] sm:$0xff] %vm1782_vm10, %v1779_v35  ;;  %v1777_v37 = vpop.permute.xlu0 %1776 }
 0x4ad   : > { %1783 = vst.msk [vmem:[#allocation3] sm:$0xff] %vm1782_vm10, %v1777_v37 }
 0x4b7   : > { %v1929_v55 = vpop.permute.xlu1 %1928 }
 0x4b8   : > { %1934 = vst.msk [vmem:[#allocation3 + $0x8] sm:$0xff] %vm1932_vm11, %v1929_v55  ;;  %v1927_v7 = vpop.permute.xlu0 %1926 }
 0x4b9   : > { %1933 = vst.msk [vmem:[#allocation3] sm:$0xff] %vm1932_vm11, %v1927_v7 }
 0x4bf   : > { %v1936_v1 = vld [vmem:[#allocation3 + $0x8] sm:$0xff] }
 0x4c0   : > { %v1945_v41 = vadd.f32 %v2121_v18, %v1936_v1  ;;  %v1935_v46 = vld [vmem:[#allocation3] sm:$0xff] }
 0x4c1   : > { %v1944_v42 = vadd.f32 %v2121_v18, %v1935_v46 }
 0x4c2   : > { %v1949_v44 = vsel %vm578_vm2, %v1945_v41, 0.0 }
 0x4c3   : > { %1950 = vadd.xlane.f32.xlu1 %v1949_v44  ;;  %v1946_v50 = vsel %vm578_vm2, %v1944_v42, 0.0 }
 0x4c4   : > { %1947 = vadd.xlane.f32.xlu0 %v1946_v50 }
 0x550   : > { %v1951_v27 = vpop.xlane.xlu1 %1950 }
 0x551   : > { %v1954_v51 = vmul.f32 0.03125, %v1951_v27  ;;  %v1948_v38 = vpop.xlane.xlu0 %1947 }
 0x552   : > { %v1953_v52 = vmul.f32 0.03125, %v1948_v38 }
 0x553   : > { %v1956_v54 = vsub.f32 %v1945_v41, %v1954_v51 }
 0x554   : > { %v1955_v17 = vsub.f32 %v1944_v42, %v1953_v52 }
 0x555   : > { %v1958_v36 = vmul.f32 %v1956_v54, %v1956_v54 }
 0x556   : > { %v1957_v61 = vmul.f32 %v1955_v17, %v1955_v17 }
 0x557   : > { %v1962_v9 = vsel %vm578_vm2, %v1958_v36, 0.0 }
 0x558   : > { %v1959_v63 = vsel %vm578_vm2, %v1957_v61, 0.0 }
 0x559   : > { %1960 = vadd.xlane.f32.xlu0 %v1959_v63 }
 0x55d   : > { %1963 = vadd.xlane.f32.xlu0 %v1962_v9 }
 0x5e6   : > { %v1961_v60 = vpop.xlane.xlu0 %1960 }
 0x5e7   : > { %v1965_v5 = vmul.f32 0.03125, %v1961_v60 }
 0x5e9   : > { %v1967_v25 = vadd.f32 1e-05, %v1965_v5 }
 0x5ea   : > { %v1964_v45 = vpop.xlane.xlu0 %1963 }
 0x5eb   : > { %2620 = vrsqrt.f32 %v1967_v25  ;;  %v1966_v6 = vmul.f32 0.03125, %v1964_v45 }
 0x5ed   : > { %v1968_v3 = vadd.f32 1e-05, %v1966_v6 }
 0x5ef   : > { %2622 = vrsqrt.f32 %v1968_v3 }
 0x5f5   : > { %v2621_v43 = vpop.eup %2620 }
 0x5f6   : > { %v1971_v8 = vmul.f32 %v2621_v43, %v1955_v17 }
 0x5f8   : > { %v1980_v16 = vmul.f32 %v2122_v53, %v1971_v8 }
 0x5f9   : > { %v2623_v48 = vpop.eup %2622 }
 0x5fa   : > { %v1989_v40 = vadd.f32 %v2123_v11, %v1980_v16  ;;  %v1972_v20 = vmul.f32 %v2623_v48, %v1956_v54 }
 0x5fc   : > { %v1981_v62 = vmul.f32 %v2122_v53, %v1972_v20  ;;  %v1991_v58 = vmax.f32 %v1989_v40, 0.0 }
 0x5fe   : > { %v1990_v59 = vadd.f32 %v2123_v11, %v1981_v62  ;;  %1993 = vst.msk [vmem:[%s342_s22] sm:$0xff] %vm578_vm2, %v1991_v58 }
 0x600   : > { %v1992_v21 = vmax.f32 %v1990_v59, 0.0 }
 0x602   : > { %1994 = vst.msk [vmem:[%s342_s22 + $0x8] sm:$0xff] %vm578_vm2, %v1992_v21 }
 0x603   : > { %2637 = shalt.err (!%p2634_p3)
}
 0x604   : > { %s2638_s28 = scalar_lea.hbm %s3191_s27, 256  ;;  %s2642_s25 = scalar_lea.hbm %s3247_s9, 512 }
 0x605   : > { %p2639_p4 = scmp.ne.s32.totalorder %s3191_s27, %s2638_s28  ;;  %p2643_p9 = scmp.lt.u32.totalorder %s3191_s27, %s3247_s9 }
 0x606   : > { %p2644_p10 = scmp.lt.u32.totalorder %s2642_s25, %s2638_s28  ;;  %p2646_p12 = scmp.lt.u32.totalorder %s2638_s28, %s3191_s27 }
 0x607   : > { %p2640_p7 = pnand %p2639_p4, %p2803_p5 }
 0x608   : > { %p2645_p11 = por %p2644_p10, %p2643_p9 }
 0x609   : > { %p2641_p8 = pneg %p2640_p7 }
 0x60a   : > { %p2647_p13 = por %p2646_p12, %p2645_p11 }
 0x60c   : > { %p2648_p0 = pnand %p2647_p13, %p2641_p8 }
 0x60e   : > { %2651 = shalt.err (!%p2648_p0)
}
 0x60f   : > { %s2714_s13 = smov 128  }
 0x610   : > { %2404 = dma.vmem_to_hbm [thread:$0]  (%p2803_p5), %s3193_s24, 256, %s3191_s27, %s3196_s23, %s2714_s13, %s2714_s13, %s2707_s14  }
 0x611 PF: > { %p2410_p1 = scmp.ge.s32.totalorder %s2686_s12, 2  ;;  %s2024_s16 = sand.u32 1, %s2674_s30  }
 0x612   : > { %s2025_s17 = scalar_lea.sflag [#allocation5], %s2024_s16 }
 0x613   : > { %p2407_p2 = pnand %p2410_p1, %p2807_p6 }
 0x615   : > { %2669 = dma.done.wait (!%p2407_p2), %s2025_s17, 256  }
 0x616   : > { %2671 = vsyncadd (!%p2407_p2), %s2025_s17, 4294967040  ;;  %p19_p3 = scmp.ge.s32.totalorder %s2790_s15, 4   ;;  %s3252_s30 = smov %s2678_s10 }
 0x617   : > { %s3253_s10 = smov %s2682_s11  ;;  %s3254_s11 = smov %s2801_s18 }
 0x618   : > { %s3255_s12 = smov %s2790_s15  ;;  %21 = sbr.rel (!%p19_p3) target bundleno = 3 (0x3), region = 94 }
 0x61f   :  { %2030 = vsyncpa [#allocation5], 1 }
 0x620   :  { %2032 = vsyncpa [#allocation5 + $0x1], 1 }

</bundles_post_ra>
